<compile_context>
chip_gen: v6e
topology: v6e:2x2x1
jax: 0.10.0
libtpu: 0.0.40
codegen_flags: <defaults>
</compile_context>

<pallas_src>
import functools
import math

import jax
import jax.numpy as jnp
from jax.experimental import pallas as pl
from jax.experimental.pallas import tpu as pltpu


def _conv_bn_silu_kernel(x_ref, w_ref, bias_ref, o_ref, patch_ref, *, K):
    """Grid = (N, H // TH): one TH-row band of one image per step.

    x_ref:     (1, Hp, Wp, C1)   zero-padded NHWC image, resident across bands (f32)
    w_ref:     (K*K*C1, C2p)     conv weight with BN scale folded in (bf16, C2 padded)
    bias_ref:  (1, C2p)          folded BN bias (f32)
    o_ref:     (1, TH*W, C2p)    lane-dense output slab for this band (bf16)
    patch_ref: (TH, W, K*K*C1)   bf16 im2col scratch for this band
    """
    TH, W, KKC1 = patch_ref.shape
    C1 = x_ref.shape[3]
    row0 = pl.multiple_of(pl.program_id(1) * TH, TH)   # first padded input row of band

    # im2col: copy each shifted window straight from the resident padded-image ref
    # into its lane slot of the bf16 patch slab (cast at the write). Static K*K
    # Python loop -> fully unrolled. The padded image is never held live as one
    # big value, so vreg pressure stays low.
    for kh in range(K):
        for kw in range(K):
            col = (kh * K + kw) * C1
            patch_ref[:, :, col:col + C1] = (
                x_ref[0, pl.ds(row0 + kh, TH), kw:kw + W, :].astype(jnp.bfloat16))

    # Single wide MXU contraction for the band: (TH*W, K*K*C1) x (K*K*C1, C2p),
    # bf16 operands, f32 accumulation. (Reshape stays a free view when W is a
    # multiple of the sublane tile; worst case Mosaic inserts one relayout copy.)
    # TODO(synk): for large-C1 layers (C1 >= 256) skip the im2col slab and accumulate
    # K*K shifted matmuls into an f32 VMEM accumulator instead (9x less scratch).
    p = patch_ref[...].reshape(TH * W, KKC1)
    acc = jnp.dot(p, w_ref[...], preferred_element_type=jnp.float32)

    # BN bias (scale already folded into the weight) + SiLU in f32; single cast on
    # the full-lane (C2p % 128 == 0) unmasked bf16 store.
    y = acc + bias_ref[...]
    y = y * jax.nn.sigmoid(y)
    o_ref[0] = y.astype(o_ref.dtype)


def _pick_row_tile(H, W, kkc1, c2p, budget_bytes=8 * 1024 * 1024):
    """Largest divisor of H whose per-band buffers (bf16 patch + double-buffered bf16
    output block) fit the budget, capped so each image gets >= 2 bands (pipelining /
    megacore). For production shapes prefer TH*W >= 512 so the MXU M-dim stays full."""
    divisors = [d for d in range(1, H + 1) if H % d == 0]
    cap = max((d for d in divisors if d < H), default=H) if H > 1 else H
    best = 1
    for th in divisors:
        if th > cap:
            continue
        band_bytes = th * W * kkc1 * 2 + 2 * th * W * c2p * 2
        if band_bytes <= budget_bytes:
            best = th
    return best


def conv_bn_silu(x_nchw, weight_oihw, gamma, beta, running_mean, running_var,
                 *, k=3, p=None, eps=1e-5):
    """Equivalent of ultralytics Conv.forward (conv -> BN(eval) -> SiLU), s=1/g=1/d=1."""
    if p is None:
        p = k // 2                                    # autopad(k), d=1
    N, C1, H, W = x_nchw.shape
    C2 = weight_oihw.shape[0]
    assert weight_oihw.shape == (C2, C1, k, k), "groups=1 / dilation=1 only"
    assert k % 2 == 1 and p == k // 2, "kernel assumes s=1 'same' padding (p = k//2)"

    C2p = max(128, ((C2 + 127) // 128) * 128)         # lane-dense output channels
    Hp, Wp = H + 2 * p, W + 2 * p
    KKC1 = k * k * C1

    # NCHW -> NHWC, spatial zero padding. The stem input stays f32 (C1=4 is tiny);
    # production layers (C1 >= 64) should feed bf16 here to halve the input DMA.
    x = jnp.transpose(x_nchw, (0, 2, 3, 1))
    xp = jnp.pad(x, ((0, 0), (p, p), (p, p), (0, 0))).astype(jnp.float32)

    # Fold BatchNorm2d (inference) into the weight and a per-channel bias.
    scale = gamma / jnp.sqrt(running_var + eps)                     # (C2,)
    bias = beta - running_mean * scale                              # (C2,)
    w = jnp.transpose(weight_oihw, (2, 3, 1, 0)) * scale            # OIHW -> HWIO, BN-scaled
    w = w.reshape(KKC1, C2)                                         # contraction-major
    w = jnp.pad(w, ((0, 0), (0, C2p - C2))).astype(jnp.bfloat16)    # bf16 MXU operand
    bias = jnp.pad(bias, (0, C2p - C2)).reshape(1, C2p).astype(jnp.float32)

    TH = _pick_row_tile(H, W, KKC1, C2p)
    n_bands = H // TH

    # Explicit VMEM budget for this launch (lane-padded input image double-buffered,
    # single-buffered weight/bias, bf16 patch band, double-buffered output band).
    c1_lanes = ((C1 + 127) // 128) * 128
    vmem_bytes = (2 * Hp * Wp * c1_lanes * 4
                  + KKC1 * C2p * 2 + C2p * 4
                  + TH * W * KKC1 * 2
                  + 2 * TH * W * C2p * 2)
    vmem_limit = int(min(max(2 * vmem_bytes, 16 * 1024 * 1024), 48 * 1024 * 1024))

    cost = pl.CostEstimate(
        flops=2 * N * H * W * KKC1 * C2p,
        transcendentals=N * H * W * C2p,
        bytes_accessed=(N * Hp * Wp * C1 * 4 + KKC1 * C2p * 2 + C2p * 4
                        + N * H * W * C2p * 2))

    kernel = functools.partial(_conv_bn_silu_kernel, K=k)

    out = pl.pallas_call(
        kernel,
        out_shape=jax.ShapeDtypeStruct((N, H * W, C2p), jnp.bfloat16),
        grid_spec=pltpu.PrefetchScalarGridSpec(
            num_scalar_prefetch=0,
            grid=(N, n_bands),
            in_specs=[
                # Whole padded image; index_map invariant in the band axis -> fetched
                # once per image, kept resident, no re-DMA per band.
                # TODO(synk): for very large feature maps replace with a halo'd
                # (TH + 2p)-row block (pl.Element-indexed H dim or a manual
                # double-buffered DMA) so the input tile is capped as well.
                pl.BlockSpec((1, Hp, Wp, C1), lambda n, j: (n, 0, 0, 0)),
                # Weight / bias never change -> single-buffered, stay resident.
                pl.BlockSpec((KKC1, C2p), lambda n, j: (0, 0),
                             pipeline_mode=pl.Buffered(1)),
                pl.BlockSpec((1, C2p), lambda n, j: (0, 0),
                             pipeline_mode=pl.Buffered(1)),
            ],
            out_specs=pl.BlockSpec((1, TH * W, C2p), lambda n, j: (n, j, 0)),
            scratch_shapes=[pltpu.VMEM((TH, W, KKC1), jnp.bfloat16)],
        ),
        compiler_params=pltpu.CompilerParams(
            dimension_semantics=("parallel", "parallel"),   # images x row bands
            vmem_limit_bytes=vmem_limit),
        cost_estimate=cost,
    )(xp, w, bias)

    # Drop channel padding, back to PyTorch NCHW convention (caller dtype).
    out = out[:, :, :C2].reshape(N, H, W, C2)
    return jnp.transpose(out, (0, 3, 1, 2)).astype(x_nchw.dtype)


if __name__ == "__main__":
    # Module config: Conv(c1=4, c2=8, k=3, s=1) -> pad = autopad(3) = 1
    N, C1, C2, H, W, K = 2, 4, 8, 16, 16, 3

    key = jax.random.PRNGKey(0)
    kx, kw_, kg, kb, km, kv = jax.random.split(key, 6)

    x = jax.random.normal(kx, (N, C1, H, W), dtype=jnp.float32)
    fan_in = C1 * K * K
    weight = jax.random.normal(kw_, (C2, C1, K, K), dtype=jnp.float32) / math.sqrt(fan_in)
    gamma = 1.0 + 0.1 * jax.random.normal(kg, (C2,), dtype=jnp.float32)
    beta = 0.1 * jax.random.normal(kb, (C2,), dtype=jnp.float32)
    running_mean = 0.1 * jax.random.normal(km, (C2,), dtype=jnp.float32)
    running_var = 1.0 + 0.1 * jnp.abs(jax.random.normal(kv, (C2,), dtype=jnp.float32))

    out = conv_bn_silu(x, weight, gamma, beta, running_mean, running_var, k=K)
    out = jax.block_until_ready(out)

    # Pure-JAX f32 reference (PyTorch conv + BN(eval) + SiLU semantics).
    eps = 1e-5
    ref = jax.lax.conv_general_dilated(
        x, weight, window_strides=(1, 1),
        padding=((K // 2, K // 2), (K // 2, K // 2)),
        dimension_numbers=("NCHW", "OIHW", "NCHW"))
    scale = (gamma / jnp.sqrt(running_var + eps)).reshape(1, C2, 1, 1)
    bias = (beta - running_mean * gamma / jnp.sqrt(running_var + eps)).reshape(1, C2, 1, 1)
    ref = ref * scale + bias
    ref = ref * jax.nn.sigmoid(ref)

    assert out.shape == (N, C2, H, W)
    # bf16 MXU operands + bf16 output slab -> compare at bf16-level tolerance.
    assert jnp.allclose(out.astype(jnp.float32), ref, atol=5e-2, rtol=5e-2), \
        "mismatch vs reference"
    print("KERNEL_OK")
</pallas_src>

<mosaic_0001>
module attributes {stable_mosaic.version = 11 : i64} {
  func.func @_conv_bn_silu_kernel(%arg0: i32, %arg1: i32, %arg2: memref<1x18x18x4xf32, #tpu.memory_space<vmem>>, %arg3: memref<36x128xbf16, #tpu.memory_space<vmem>>, %arg4: memref<1x128xf32, #tpu.memory_space<vmem>>, %arg5: memref<1x128x128xbf16, #tpu.memory_space<vmem>>, %arg6: memref<8x16x36xbf16, #tpu.memory_space<vmem>>) attributes {dimension_semantics = [#tpu.dimension_semantics<parallel>, #tpu.dimension_semantics<parallel>], iteration_bounds = array<i64: 2, 2>, scalar_prefetch = 0 : i64, scratch_operands = 1 : i64, tpu.core_type = #tpu.core_type<tc>, window_params = [{transform_indices = @transform_0, window_bounds = array<i64: 1, 18, 18, 4>}, {pipeline_mode = #tpu.pipeline_mode<synchronous>, transform_indices = @transform_1, window_bounds = array<i64: 36, 128>}, {pipeline_mode = #tpu.pipeline_mode<synchronous>, transform_indices = @transform_2, window_bounds = array<i64: 1, 128>}, {transform_indices = @transform_3, window_bounds = array<i64: 1, 128, 128>}]} {
    %c8_i32 = arith.constant 8 : i32
    %0 = arith.muli %arg1, %c8_i32 : i32
    %1 = tpu.assume_multiple %0, 8 : i32
    %c0_i32 = arith.constant 0 : i32
    %2 = arith.addi %1, %c0_i32 : i32
    %c0 = arith.constant 0 : index
    %3 = arith.index_cast %2 : i32 to index
    %c0_0 = arith.constant 0 : index
    %c0_1 = arith.constant 0 : index
    %4 = vector.load %arg2[%c0, %3, %c0_0, %c0_1] : memref<1x18x18x4xf32, #tpu.memory_space<vmem>>, vector<1x8x16x4xf32>
    %5 = vector.shape_cast %4 : vector<1x8x16x4xf32> to vector<8x16x4xf32>
    %6 = arith.truncf %5 : vector<8x16x4xf32> to vector<8x16x4xbf16>
    %c0_2 = arith.constant 0 : index
    %c0_3 = arith.constant 0 : index
    %c0_4 = arith.constant 0 : index
    %7 = vector.load %arg6[%c0_2, %c0_3, %c0_4] : memref<8x16x36xbf16, #tpu.memory_space<vmem>>, vector<8x16x4xbf16>
    tpu.vector_store %arg6[%c0_2, %c0_3, %c0_4], %6 {strides = array<i32>} : memref<8x16x36xbf16, #tpu.memory_space<vmem>>, vector<8x16x4xbf16>,
    %c0_i32_5 = arith.constant 0 : i32
    %8 = arith.addi %1, %c0_i32_5 : i32
    %c0_6 = arith.constant 0 : index
    %9 = arith.index_cast %8 : i32 to index
    %c1 = arith.constant 1 : index
    %c0_7 = arith.constant 0 : index
    %10 = vector.load %arg2[%c0_6, %9, %c1, %c0_7] : memref<1x18x18x4xf32, #tpu.memory_space<vmem>>, vector<1x8x16x4xf32>
    %11 = vector.shape_cast %10 : vector<1x8x16x4xf32> to vector<8x16x4xf32>
    %12 = arith.truncf %11 : vector<8x16x4xf32> to vector<8x16x4xbf16>
    %c0_8 = arith.constant 0 : index
    %c0_9 = arith.constant 0 : index
    %c4 = arith.constant 4 : index
    %13 = vector.load %arg6[%c0_8, %c0_9, %c4] : memref<8x16x36xbf16, #tpu.memory_space<vmem>>, vector<8x16x4xbf16>
    tpu.vector_store %arg6[%c0_8, %c0_9, %c4], %12 {strides = array<i32>} : memref<8x16x36xbf16, #tpu.memory_space<vmem>>, vector<8x16x4xbf16>,
    %c0_i32_10 = arith.constant 0 : i32
    %14 = arith.addi %1, %c0_i32_10 : i32
    %c0_11 = arith.constant 0 : index
    %15 = arith.index_cast %14 : i32 to index
    %c2 = arith.constant 2 : index
    %c0_12 = arith.constant 0 : index
    %16 = vector.load %arg2[%c0_11, %15, %c2, %c0_12] : memref<1x18x18x4xf32, #tpu.memory_space<vmem>>, vector<1x8x16x4xf32>
    %17 = vector.shape_cast %16 : vector<1x8x16x4xf32> to vector<8x16x4xf32>
    %18 = arith.truncf %17 : vector<8x16x4xf32> to vector<8x16x4xbf16>
    %c0_13 = arith.constant 0 : index
    %c0_14 = arith.constant 0 : index
    %c8 = arith.constant 8 : index
    %19 = vector.load %arg6[%c0_13, %c0_14, %c8] : memref<8x16x36xbf16, #tpu.memory_space<vmem>>, vector<8x16x4xbf16>
    tpu.vector_store %arg6[%c0_13, %c0_14, %c8], %18 {strides = array<i32>} : memref<8x16x36xbf16, #tpu.memory_space<vmem>>, vector<8x16x4xbf16>,
    %c1_i32 = arith.constant 1 : i32
    %20 = arith.addi %1, %c1_i32 : i32
    %c0_15 = arith.constant 0 : index
    %21 = arith.index_cast %20 : i32 to index
    %c0_16 = arith.constant 0 : index
    %c0_17 = arith.constant 0 : index
    %22 = vector.load %arg2[%c0_15, %21, %c0_16, %c0_17] : memref<1x18x18x4xf32, #tpu.memory_space<vmem>>, vector<1x8x16x4xf32>
    %23 = vector.shape_cast %22 : vector<1x8x16x4xf32> to vector<8x16x4xf32>
    %24 = arith.truncf %23 : vector<8x16x4xf32> to vector<8x16x4xbf16>
    %c0_18 = arith.constant 0 : index
    %c0_19 = arith.constant 0 : index
    %c12 = arith.constant 12 : index
    %25 = vector.load %arg6[%c0_18, %c0_19, %c12] : memref<8x16x36xbf16, #tpu.memory_space<vmem>>, vector<8x16x4xbf16>
    tpu.vector_store %arg6[%c0_18, %c0_19, %c12], %24 {strides = array<i32>} : memref<8x16x36xbf16, #tpu.memory_space<vmem>>, vector<8x16x4xbf16>,
    %c1_i32_20 = arith.constant 1 : i32
    %26 = arith.addi %1, %c1_i32_20 : i32
    %c0_21 = arith.constant 0 : index
    %27 = arith.index_cast %26 : i32 to index
    %c1_22 = arith.constant 1 : index
    %c0_23 = arith.constant 0 : index
    %28 = vector.load %arg2[%c0_21, %27, %c1_22, %c0_23] : memref<1x18x18x4xf32, #tpu.memory_space<vmem>>, vector<1x8x16x4xf32>
    %29 = vector.shape_cast %28 : vector<1x8x16x4xf32> to vector<8x16x4xf32>
    %30 = arith.truncf %29 : vector<8x16x4xf32> to vector<8x16x4xbf16>
    %c0_24 = arith.constant 0 : index
    %c0_25 = arith.constant 0 : index
    %c16 = arith.constant 16 : index
    %31 = vector.load %arg6[%c0_24, %c0_25, %c16] : memref<8x16x36xbf16, #tpu.memory_space<vmem>>, vector<8x16x4xbf16>
    tpu.vector_store %arg6[%c0_24, %c0_25, %c16], %30 {strides = array<i32>} : memref<8x16x36xbf16, #tpu.memory_space<vmem>>, vector<8x16x4xbf16>,
    %c1_i32_26 = arith.constant 1 : i32
    %32 = arith.addi %1, %c1_i32_26 : i32
    %c0_27 = arith.constant 0 : index
    %33 = arith.index_cast %32 : i32 to index
    %c2_28 = arith.constant 2 : index
    %c0_29 = arith.constant 0 : index
    %34 = vector.load %arg2[%c0_27, %33, %c2_28, %c0_29] : memref<1x18x18x4xf32, #tpu.memory_space<vmem>>, vector<1x8x16x4xf32>
    %35 = vector.shape_cast %34 : vector<1x8x16x4xf32> to vector<8x16x4xf32>
    %36 = arith.truncf %35 : vector<8x16x4xf32> to vector<8x16x4xbf16>
    %c0_30 = arith.constant 0 : index
    %c0_31 = arith.constant 0 : index
    %c20 = arith.constant 20 : index
    %37 = vector.load %arg6[%c0_30, %c0_31, %c20] : memref<8x16x36xbf16, #tpu.memory_space<vmem>>, vector<8x16x4xbf16>
    tpu.vector_store %arg6[%c0_30, %c0_31, %c20], %36 {strides = array<i32>} : memref<8x16x36xbf16, #tpu.memory_space<vmem>>, vector<8x16x4xbf16>,
    %c2_i32 = arith.constant 2 : i32
    %38 = arith.addi %1, %c2_i32 : i32
    %c0_32 = arith.constant 0 : index
    %39 = arith.index_cast %38 : i32 to index
    %c0_33 = arith.constant 0 : index
    %c0_34 = arith.constant 0 : index
    %40 = vector.load %arg2[%c0_32, %39, %c0_33, %c0_34] : memref<1x18x18x4xf32, #tpu.memory_space<vmem>>, vector<1x8x16x4xf32>
    %41 = vector.shape_cast %40 : vector<1x8x16x4xf32> to vector<8x16x4xf32>
    %42 = arith.truncf %41 : vector<8x16x4xf32> to vector<8x16x4xbf16>
    %c0_35 = arith.constant 0 : index
    %c0_36 = arith.constant 0 : index
    %c24 = arith.constant 24 : index
    %43 = vector.load %arg6[%c0_35, %c0_36, %c24] : memref<8x16x36xbf16, #tpu.memory_space<vmem>>, vector<8x16x4xbf16>
    tpu.vector_store %arg6[%c0_35, %c0_36, %c24], %42 {strides = array<i32>} : memref<8x16x36xbf16, #tpu.memory_space<vmem>>, vector<8x16x4xbf16>,
    %c2_i32_37 = arith.constant 2 : i32
    %44 = arith.addi %1, %c2_i32_37 : i32
    %c0_38 = arith.constant 0 : index
    %45 = arith.index_cast %44 : i32 to index
    %c1_39 = arith.constant 1 : index
    %c0_40 = arith.constant 0 : index
    %46 = vector.load %arg2[%c0_38, %45, %c1_39, %c0_40] : memref<1x18x18x4xf32, #tpu.memory_space<vmem>>, vector<1x8x16x4xf32>
    %47 = vector.shape_cast %46 : vector<1x8x16x4xf32> to vector<8x16x4xf32>
    %48 = arith.truncf %47 : vector<8x16x4xf32> to vector<8x16x4xbf16>
    %c0_41 = arith.constant 0 : index
    %c0_42 = arith.constant 0 : index
    %c28 = arith.constant 28 : index
    %49 = vector.load %arg6[%c0_41, %c0_42, %c28] : memref<8x16x36xbf16, #tpu.memory_space<vmem>>, vector<8x16x4xbf16>
    tpu.vector_store %arg6[%c0_41, %c0_42, %c28], %48 {strides = array<i32>} : memref<8x16x36xbf16, #tpu.memory_space<vmem>>, vector<8x16x4xbf16>,
    %c2_i32_43 = arith.constant 2 : i32
    %50 = arith.addi %1, %c2_i32_43 : i32
    %c0_44 = arith.constant 0 : index
    %51 = arith.index_cast %50 : i32 to index
    %c2_45 = arith.constant 2 : index
    %c0_46 = arith.constant 0 : index
    %52 = vector.load %arg2[%c0_44, %51, %c2_45, %c0_46] : memref<1x18x18x4xf32, #tpu.memory_space<vmem>>, vector<1x8x16x4xf32>
    %53 = vector.shape_cast %52 : vector<1x8x16x4xf32> to vector<8x16x4xf32>
    %54 = arith.truncf %53 : vector<8x16x4xf32> to vector<8x16x4xbf16>
    %c0_47 = arith.constant 0 : index
    %c0_48 = arith.constant 0 : index
    %c32 = arith.constant 32 : index
    %55 = vector.load %arg6[%c0_47, %c0_48, %c32] : memref<8x16x36xbf16, #tpu.memory_space<vmem>>, vector<8x16x4xbf16>
    tpu.vector_store %arg6[%c0_47, %c0_48, %c32], %54 {strides = array<i32>} : memref<8x16x36xbf16, #tpu.memory_space<vmem>>, vector<8x16x4xbf16>,
    %c0_49 = arith.constant 0 : index
    %c0_50 = arith.constant 0 : index
    %c0_51 = arith.constant 0 : index
    %56 = vector.load %arg6[%c0_49, %c0_50, %c0_51] : memref<8x16x36xbf16, #tpu.memory_space<vmem>>, vector<8x16x36xbf16>
    %57 = vector.shape_cast %56 : vector<8x16x36xbf16> to vector<128x36xbf16>
    %c0_52 = arith.constant 0 : index
    %c0_53 = arith.constant 0 : index
    %58 = vector.load %arg3[%c0_52, %c0_53] : memref<36x128xbf16, #tpu.memory_space<vmem>>, vector<36x128xbf16>
    %cst = arith.constant dense<0.000000e+00> : vector<128x128xf32>
    %59 = tpu.matmul %57, %58, %cst {dimension_numbers = #tpu.dot_dimension_numbers<[1], [0], [0], [1], [0, 0, 1, 1], [], []>} : vector<128x36xbf16>, vector<36x128xbf16>, vector<128x128xf32> -> vector<128x128xf32>
    %c0_54 = arith.constant 0 : index
    %c0_55 = arith.constant 0 : index
    %60 = vector.load %arg4[%c0_54, %c0_55] : memref<1x128xf32, #tpu.memory_space<vmem>>, vector<1x128xf32>
    %61 = vector.broadcast %60 : vector<1x128xf32> to vector<128x128xf32>
    %62 = arith.addf %59, %61 : vector<128x128xf32>
    %63 = arith.negf %62 : vector<128x128xf32>
    %64 = math.exp %63 : vector<128x128xf32>
    %cst_56 = arith.constant 1.000000e+00 : f32
    %65 = vector.broadcast %cst_56 : f32 to vector<128x128xf32>
    %66 = arith.addf %65, %64 : vector<128x128xf32>
    %67 = arith.divf %65, %66 : vector<128x128xf32>
    %68 = arith.mulf %62, %67 : vector<128x128xf32>
    %69 = arith.truncf %68 : vector<128x128xf32> to vector<128x128xbf16>
    %c0_57 = arith.constant 0 : index
    %c0_58 = arith.constant 0 : index
    %c0_59 = arith.constant 0 : index
    %70 = vector.load %arg5[%c0_57, %c0_58, %c0_59] : memref<1x128x128xbf16, #tpu.memory_space<vmem>>, vector<1x128x128xbf16>
    %71 = vector.shape_cast %70 : vector<1x128x128xbf16> to vector<128x128xbf16>
    %72 = vector.shape_cast %69 : vector<128x128xbf16> to vector<1x128x128xbf16>
    tpu.vector_store %arg5[%c0_57, %c0_58, %c0_59], %72 {strides = array<i32>} : memref<1x128x128xbf16, #tpu.memory_space<vmem>>, vector<1x128x128xbf16>,
    return
  }
  func.func @transform_0(%arg0: i32, %arg1: i32) -> (i32, i32, i32, i32) {
    %c0_i32 = arith.constant 0 : i32
    %c0_i32_0 = arith.constant 0 : i32
    %c0_i32_1 = arith.constant 0 : i32
    %c0_i32_2 = arith.constant 0 : i32
    return %arg0, %c0_i32, %c0_i32_0, %c0_i32_1 : i32, i32, i32, i32
  }
  func.func @transform_1(%arg0: i32, %arg1: i32) -> (i32, i32) {
    %c0_i32 = arith.constant 0 : i32
    %c0_i32_0 = arith.constant 0 : i32
    %c0_i32_1 = arith.constant 0 : i32
    return %c0_i32, %c0_i32_0 : i32, i32
  }
  func.func @transform_2(%arg0: i32, %arg1: i32) -> (i32, i32) {
    %c0_i32 = arith.constant 0 : i32
    %c0_i32_0 = arith.constant 0 : i32
    %c0_i32_1 = arith.constant 0 : i32
    return %c0_i32, %c0_i32_0 : i32, i32
  }
  func.func @transform_3(%arg0: i32, %arg1: i32) -> (i32, i32, i32) {
    %c0_i32 = arith.constant 0 : i32
    %c0_i32_0 = arith.constant 0 : i32
    return %arg0, %arg1, %c0_i32 : i32, i32, i32
  }
}

</mosaic_0001>

<bundles_post_ra>
// kernel: tpu_custom_call.1
= control target key start
LH: loop header
LB: loop body
LE: loop exit
PB: predicated region body
PF: predicated region fallthrough
CT: control target
= control target key end

     0   :  { %8 = vsyncpa [#allocation4], 0  ;;  %s3415_s0 = inlined_call_operand.vmem [shape: f32[2,18,18,4], index: 0, kind: input, shape index: {}]   ;;  %s3416_s1 = inlined_call_operand.vmem [shape: bf16[36,128], index: 1, kind: input, shape index: {}]   ;;  %s3417_s2 = inlined_call_operand.vmem [shape: f32[1,128], index: 2, kind: input, shape index: {}]   ;;  %s3418_s3 = inlined_call_operand.hbm [shape: bf16[2,256,128], index: 3, kind: output, shape index: {}]  }
   0x1   :  { %10 = vsyncpa [#allocation4 + $0x1], 0  ;;  %s2665_s12 = smov 0   ;;  %s2667_s13 = smov 0  }
   0x2   :  { %s2669_s14 = smov 0   ;;  %s2671_s15 = smov 0  }
   0x3   :  { %s2673_s16 = smov 0   ;;  %s2675_s17 = smov 0  }
   0x4   :  { %s2677_s18 = smov 0   ;;  %s2679_s19 = smov 0  }
   0x5 LB: > { %s1826_s20 = sadd.s32 4294967295, %s2633_s19   ;;  %s1827_s21 = sadd.s32 4294967294, %s2633_s19   ;;  %s2633_s19 = sphi %s2679_s19, %s16_s19   ;;  %s2629_s18 = sphi %s2677_s18, %s3427_s18   ;;  %s2625_s17 = sphi %s2675_s17, %s3426_s17   ;;  %s2621_s16 = sphi %s2673_s16, %s3425_s16   ;;  %s2617_s15 = sphi %s2671_s15, %s3424_s15   ;;  %s2613_s14 = sphi %s2669_s14, %s3423_s14   ;;  %s2609_s13 = sphi %s2667_s13, %s3422_s13   ;;  %s2605_s12 = sphi %s2665_s12, %s3421_s12  }
   0x6   : > { %s25_s22 = sadd.s32 1, %s2625_s17  ;;  %s28_s23 = sadd.s32 1, %s2629_s18 }
   0x7   : > { %p26_p0 = scmp.ge.s32.totalorder %s25_s22, 2  ;;  %p115_p1 = scmp.ne.s32.totalorder %s2613_s14, %s2609_s13 }
   0x8   : > { %p116_p2 = scmp.eq.s32.totalorder %s1826_s20, 3  ;;  %p121_p5 = scmp.ne.s32.totalorder %s2609_s13, %s2605_s12 }
   0x9   : > { %s3429_s22 = smov (%p26_p0, %s25_s22), 0  ;;  %s3431_s23 = smov (!%p26_p0, %s28_s23), %s2629_s18 }
   0xa   : > { %s101_s24 = ssub.s32 %s2625_s17, %s3429_s22  ;;  %p2716_p3 = por %p116_p2, %p115_p1 }
   0xb   : > { %p30_p4 = scmp.ge.s32.totalorder %s3431_s23, 2  ;;  %p122_p6 = scmp.eq.s32.totalorder %s1827_s21, 3 }
   0xc   : > { %p1830_p7 = scmp.ge.s32.totalorder %s2633_s19, 1  ;;  %p154_p9 = scmp.lt.s32.totalorder %s2633_s19, 5 }
   0xd   : > { %s3433_s23 = smov (%p30_p4, %s3431_s23), 0  ;;  %p2725_p8 = por %p122_p6, %p121_p5 }
   0xe   : > { %s100_s27 = ssub.s32 %s2629_s18, %s3433_s23  ;;  %s105_s28 = sadd.s32 1, %s2613_s14 }
   0xf   : > { %s102_s29 = sor.u32 %s101_s24, %s100_s27  ;;  %p155_p10 = pnand %p1830_p7, %p154_p9 }
  0x10   : > { %p103_p11 = scmp.eq.s32.totalorder %s102_s29, 0  ;;  %p178_p12 = scmp.lt.s32.totalorder (!%p155_p10), %s2621_s16, 1 }
  0x11   : > { %158 = sbr.rel (%p155_p10) target bundleno = 658 (0x292), region = 32  ;;  %s2635_s11 = smov (!%p155_p10), 4  }
  0x12   : > { %s2734_s30 = scalar_select %p103_p11, %s2613_s14, %s105_s28  }
  0x13   : > { %s1834_s5 = smul.u32 (!%p155_p10), 192, %s2617_s15  ;;  %s2636_s20 = smov (!%p155_p10), 8  }
  0x14   : > { %s2637_s21 = smov (!%p155_p10), 12   ;;  %s2638_s24 = smov (!%p155_p10), 16  }
  0x15   : > { %s2639_s27 = smov (!%p155_p10), 20   ;;  %s2640_s28 = smov (!%p155_p10), 24  }
  0x16   : > { %s179_s4 = scalar_select %p178_p12, %s2621_s16, 1  ;;  %vm268_vm0 = vcmask 27648   ;;  %vm397_vm1 = vcmask 60448   ;;  %vm1431_vm2 = vcmask 1041408   ;;  %vm526_vm3 = vcmask 93248  }
  0x17   : > { %s2641_s29 = smov 28   ;;  %vm658_vm4 = vcmask 126048   ;;  %vm787_vm5 = vcmask 158848   ;;  %vm916_vm6 = vcmask 191648   ;;  %vm1048_vm7 = vcmask 224448  }
  0x18   : > { %s2385_s6 = smul.u32 432, %s179_s4  ;;  %vm1177_vm8 = vcmask 257248   ;;  %vm1306_vm9 = vcmask 290048   ;;  %vm1406_vm10 = vcmask 293888  }
  0x1a   : > { %s182_s9 = scalar_lea.vmem %s3415_s0, %s2385_s6  ;;  %s2642_s6 = smov 32  }
  0x1b   : > { %s2742_s10 = scalar_lea.vmem %s182_s9, %s1834_s5 }
  0x1c   : > { %v293_v0 = vld [vmem:[%s2742_s10 + $0x61] sm:$0xff]  ;;  %v294_v2 = vld [vmem:[%s2742_s10 + $0x69] sm:$0xff]  ;;  %v287_v9 = vld [vmem:[%s2742_s10 + $0x19] sm:$0xff] }
  0x1d   : > { %v285_v1 = vld [vmem:[%s2742_s10 + $0x1] sm:$0xff]  ;;  %v2747_v3 = vpack.c.bf16 %v293_v0, %v293_v0  ;;  %v286_v5 = vld [vmem:[%s2742_s10 + $0x9] sm:$0xff]  ;;  %v2753_v6 = vpack.c.bf16 %v294_v2, %v294_v2  ;;  %v2760_v12 = vpack.c.bf16 %v287_v9, %v287_v9  ;;  %v1885_v15 = vld [vmem:[%s2742_s10 + $0x18] sm:$0xff] }
  0x1e   : > { %v2153_v4 = vpack.c.bf16 %v285_v1, %v285_v1  ;;  %v2154_v7 = vpack.c.bf16 %v286_v5, %v286_v5  ;;  %v288_v8 = vld [vmem:[%s2742_s10 + $0x21] sm:$0xff]  ;;  %v1893_v17 = vld [vmem:[%s2742_s10 + $0x78] sm:$0xff]  ;;  %v2771_v18 = vpack.c.bf16 %v1885_v15, %v1885_v15  ;;  %v1887_v22 = vld [vmem:[%s2742_s10 + $0x30] sm:$0xff] }
  0x1f   : > { %365 = vrot.lane.b32.xlu1 %v2747_v3, %s2635_s11  ;;  %v1886_v10 = vld [vmem:[%s2742_s10 + $0x20] sm:$0xff]  ;;  %v2758_v11 = vpack.c.bf16 %v288_v8, %v288_v8  ;;  %v2775_v20 = vpack.c.bf16 %v1893_v17, %v1893_v17  ;;  %v1888_v21 = vld [vmem:[%s2742_s10 + $0x38] sm:$0xff]  ;;  %v2782_v25 = vpack.c.bf16 %v1887_v22, %v1887_v22  ;;  %v1895_v27 = vld [vmem:[%s2742_s10 + $0x90] sm:$0xff] }
  0x20   : > { %349 = vrot.lane.b32.xlu0 %v2153_v4, %s2635_s11  ;;  %v296_v13 = vld [vmem:[%s2742_s10 + $0x81] sm:$0xff]  ;;  %v2763_v14 = vpack.c.bf16 %v1886_v10, %v1886_v10  ;;  %v295_v23 = vld [vmem:[%s2742_s10 + $0x79] sm:$0xff]  ;;  %v2780_v24 = vpack.c.bf16 %v1888_v21, %v1888_v21  ;;  %v2790_v29 = vpack.c.bf16 %v1895_v27, %v1895_v27  ;;  %271 = vst.msk [vmem:[#allocation2 + $0x8] sm:$0xf] %vm268_vm0, %v2771_v18  ;;  %v415_v30 = vld [vmem:[%s2742_s10 + $0xa] sm:$0xff] }
  0x21   : > { %v1894_v16 = vld [vmem:[%s2742_s10 + $0x80] sm:$0xff]  ;;  %v1896_v26 = vld [vmem:[%s2742_s10 + $0x98] sm:$0xff]  ;;  %279 = vst.msk [vmem:[#allocation2 + $0x28] sm:$0xf] %vm268_vm0, %v2775_v20  ;;  %273 = vst.msk [vmem:[#allocation2 + $0x10] sm:$0xf] %vm268_vm0, %v2782_v25  ;;  %v2807_v31 = vpack.c.bf16 %v296_v13, %v296_v13  ;;  %v2809_v32 = vpack.c.bf16 %v295_v23, %v295_v23  ;;  %v2170_v42 = vpack.c.bf16 %v415_v30, %v415_v30 }
  0x22   : > { %v2773_v19 = vpack.c.bf16 %v1894_v16, %v1894_v16  ;;  %272 = vst.msk [vmem:[#allocation2 + $0xc] sm:$0xf] %vm268_vm0, %v2763_v14  ;;  %v2788_v28 = vpack.c.bf16 %v1896_v26, %v1896_v26  ;;  %274 = vst.msk [vmem:[#allocation2 + $0x14] sm:$0xf] %vm268_vm0, %v2780_v24  ;;  %v414_v33 = vld [vmem:[%s2742_s10 + $0x2] sm:$0xff]  ;;  %v1986_v34 = vld [vmem:[%s2742_s10 + $0x50] sm:$0xff] }
  0x23   : > { %367 = vrot.lane.b32.xlu1 %v2753_v6, %s2635_s11  ;;  %281 = vst.msk [vmem:[#allocation2 + $0x30] sm:$0xf] %vm268_vm0, %v2790_v29  ;;  %v2817_v35 = vpack.c.bf16 %v1986_v34, %v1986_v34  ;;  %v1985_v36 = vld [vmem:[%s2742_s10 + $0x48] sm:$0xff]  ;;  %v1994_v37 = vld [vmem:[%s2742_s10 + $0xb0] sm:$0xff]  ;;  %v196_v43 = vld [vmem:[%s2742_s10 + $0x60] sm:$0xff]  ;;  %v2169_v45 = vpack.c.bf16 %v414_v33, %v414_v33 }
  0x24   : > { %351 = vrot.lane.b32.xlu0 %v2154_v7, %s2635_s11  ;;  %280 = vst.msk [vmem:[#allocation2 + $0x2c] sm:$0xf] %vm268_vm0, %v2773_v19  ;;  %282 = vst.msk [vmem:[#allocation2 + $0x34] sm:$0xf] %vm268_vm0, %v2788_v28  ;;  %v1993_v38 = vld [vmem:[%s2742_s10 + $0xa8] sm:$0xff]  ;;  %v2822_v39 = vpack.c.bf16 %v1985_v36, %v1985_v36  ;;  %v2824_v40 = vpack.c.bf16 %v1994_v37, %v1994_v37  ;;  %v188_v44 = vld [vmem:[%s2742_s10] sm:$0xff]  ;;  %v2836_v46 = vpack.c.bf16 %v196_v43, %v196_v43 }
  0x25   : > { %v2826_v41 = vpack.c.bf16 %v1993_v38, %v1993_v38  ;;  %276 = vst.msk [vmem:[#allocation2 + $0x1c] sm:$0xf] %vm268_vm0, %v2817_v35  ;;  %v2137_v47 = vpack.c.bf16 %v188_v44, %v188_v44  ;;  %v197_v48 = vld [vmem:[%s2742_s10 + $0x68] sm:$0xff]  ;;  %v416_v57 = vld [vmem:[%s2742_s10 + $0x1a] sm:$0xff]  ;;  %v1919_v1 = vld [vmem:[%s2742_s10 + $0x31] sm:$0xff] }
  0x26   : > { %v189_v49 = vld [vmem:[%s2742_s10 + $0x8] sm:$0xff]  ;;  %275 = vst.msk [vmem:[#allocation2 + $0x18] sm:$0xf] %vm268_vm0, %v2822_v39  ;;  %284 = vst.msk [vmem:[#allocation2 + $0x3c] sm:$0xf] %vm268_vm0, %v2824_v40  ;;  %v2848_v52 = vpack.c.bf16 %v197_v48, %v197_v48  ;;  %v2171_v59 = vpack.c.bf16 %v416_v57, %v416_v57  ;;  %v424_v61 = vld [vmem:[%s2742_s10 + $0x7a] sm:$0xff]  ;;  %v2902_v4 = vpack.c.bf16 %v1919_v1, %v1919_v1 }
  0x27   : > { %355 = vrot.lane.b32.xlu1 %v2758_v11, %s2635_s11  ;;  %283 = vst.msk [vmem:[#allocation2 + $0x38] sm:$0xf] %vm268_vm0, %v2826_v41  ;;  %v423_v50 = vld [vmem:[%s2742_s10 + $0x6a] sm:$0xff]  ;;  %v422_v51 = vld [vmem:[%s2742_s10 + $0x62] sm:$0xff]  ;;  %v2138_v53 = vpack.c.bf16 %v189_v49, %v189_v49  ;;  %277 = vst.msk [vmem:[#allocation2 + $0x20] sm:$0xf] %vm268_vm0, %v2836_v46  ;;  %v2179_v63 = vpack.c.bf16 %v424_v61, %v424_v61 }
  0x28   : > { %353 = vrot.lane.b32.xlu0 %v2760_v12, %s2635_s11  ;;  %269 = vst.msk [vmem:[#allocation2] sm:$0xf] %vm268_vm0, %v2137_v47  ;;  %278 = vst.msk [vmem:[#allocation2 + $0x24] sm:$0xf] %vm268_vm0, %v2848_v52  ;;  %v2858_v54 = vpack.c.bf16 %v423_v50, %v423_v50  ;;  %v2860_v55 = vpack.c.bf16 %v422_v51, %v422_v51  ;;  %v417_v56 = vld [vmem:[%s2742_s10 + $0x22] sm:$0xff]  ;;  %v1920_v0 = vld [vmem:[%s2742_s10 + $0x39] sm:$0xff] }
  0x29   : > { %270 = vst.msk [vmem:[#allocation2 + $0x4] sm:$0xf] %vm268_vm0, %v2138_v53  ;;  %v2172_v58 = vpack.c.bf16 %v417_v56, %v417_v56  ;;  %v425_v60 = vld [vmem:[%s2742_s10 + $0x82] sm:$0xff]  ;;  %v2900_v2 = vpack.c.bf16 %v1920_v0, %v1920_v0  ;;  %v1928_v5 = vld [vmem:[%s2742_s10 + $0x99] sm:$0xff]  ;;  %v1927_v7 = vld [vmem:[%s2742_s10 + $0x91] sm:$0xff] }
  0x2a   : > { %v2180_v62 = vpack.c.bf16 %v425_v60, %v425_v60  ;;  %v2910_v8 = vpack.c.bf16 %v1928_v5, %v1928_v5  ;;  %v2912_v9 = vpack.c.bf16 %v1927_v7, %v1927_v7  ;;  %v1952_v10 = vld [vmem:[%s2742_s10 + $0x3a] sm:$0xff]  ;;  %v1959_v15 = vld [vmem:[%s2742_s10 + $0x92] sm:$0xff]  ;;  %v2017_v21 = vld [vmem:[%s2742_s10 + $0x49] sm:$0xff] }
  0x2b   : > { %371 = vrot.lane.b32.xlu1 %v2807_v31, %s2635_s11  ;;  %v2936_v17 = vpack.c.bf16 %v1959_v15, %v1959_v15  ;;  %v2970_v23 = vpack.c.bf16 %v2017_v21, %v2017_v21  ;;  %v2469_v34 = vld [vmem:[%s3416_s1 + $0x8] sm:$0xff]   ;;  %v2470_v38 = vld [vmem:[%s3416_s1] sm:$0xff]   ;;  %v2058_v49 = vld [vmem:[%s2742_s10 + $0xb2] sm:$0xff] }
  0x2c   : > { %369 = vrot.lane.b32.xlu0 %v2809_v32, %s2635_s11  ;;  %v2049_v43 = vld [vmem:[%s2742_s10 + $0x4a] sm:$0xff]  ;;  %v3031_v56 = vpack.c.bf16 %v2058_v49, %v2058_v49  ;;  %v1899_v15 = vld [vmem:[%s2742_s10 + $0xc0] sm:$0xff] }
  0x2d   : > { %v3021_v48 = vpack.c.bf16 %v2049_v43, %v2049_v43  ;;  %v2057_v50 = vld [vmem:[%s2742_s10 + $0xaa] sm:$0xff]  ;;  %v1963_v43 = vld [vmem:[%s2742_s10 + $0xc2] sm:$0xff] }
  0x2e   : > { %v3033_v57 = vpack.c.bf16 %v2057_v50, %v2057_v50 }
  0x2f   : > { %480 = vrot.lane.b32.xlu1 %v2170_v42, %s2636_s20  ;;  %v2050_v42 = vld [vmem:[%s2742_s10 + $0x52] sm:$0xff] }
  0x30   : > { %478 = vrot.lane.b32.xlu0 %v2169_v45, %s2636_s20  ;;  %v3019_v47 = vpack.c.bf16 %v2050_v42, %v2050_v42  ;;  %v1964_v42 = vld [vmem:[%s2742_s10 + $0xca] sm:$0xff] }
  0x33   : > { %496 = vrot.lane.b32.xlu1 %v2858_v54, %s2636_s20 }
  0x34   : > { %494 = vrot.lane.b32.xlu0 %v2860_v55, %s2636_s20 }
  0x37   : > { %484 = vrot.lane.b32.xlu1 %v2172_v58, %s2636_s20 }
  0x38   : > { %482 = vrot.lane.b32.xlu0 %v2171_v59, %s2636_s20 }
  0x3b   : > { %500 = vrot.lane.b32.xlu1 %v2180_v62, %s2636_s20 }
  0x3c   : > { %498 = vrot.lane.b32.xlu0 %v2179_v63, %s2636_s20 }
  0x3f   : > { %612 = vrot.lane.b32.xlu1 %v2763_v14, %s2637_s21  ;;  %v1960_v14 = vld [vmem:[%s2742_s10 + $0x9a] sm:$0xff] }
  0x40   : > { %610 = vrot.lane.b32.xlu0 %v2771_v18, %s2637_s21  ;;  %v2934_v16 = vpack.c.bf16 %v1960_v14, %v1960_v14  ;;  %v2018_v18 = vld [vmem:[%s2742_s10 + $0x51] sm:$0xff]  ;;  %v1900_v14 = vld [vmem:[%s2742_s10 + $0xc8] sm:$0xff] }
  0x41   : > { %v2968_v22 = vpack.c.bf16 %v2018_v18, %v2018_v18 }
  0x43   : > { %628 = vrot.lane.b32.xlu1 %v2773_v19, %s2637_s21 }
  0x44   : > { %626 = vrot.lane.b32.xlu0 %v2775_v20, %s2637_s21 }
  0x47   : > { %616 = vrot.lane.b32.xlu1 %v2780_v24, %s2637_s21 }
  0x48   : > { %614 = vrot.lane.b32.xlu0 %v2782_v25, %s2637_s21 }
  0x4b   : > { %632 = vrot.lane.b32.xlu1 %v2788_v28, %s2637_s21 }
  0x4c   : > { %630 = vrot.lane.b32.xlu0 %v2790_v29, %s2637_s21 }
  0x4f   : > { %741 = vrot.lane.b32.xlu1 %v2758_v11, %s2638_s24  ;;  %v1951_v11 = vld [vmem:[%s2742_s10 + $0x32] sm:$0xff] }
  0x50   : > { %739 = vrot.lane.b32.xlu0 %v2760_v12, %s2638_s24  ;;  %v2924_v12 = vpack.c.bf16 %v1952_v10, %v1952_v10  ;;  %v2926_v13 = vpack.c.bf16 %v1951_v11, %v1951_v11 }
  0x53   : > { %757 = vrot.lane.b32.xlu1 %v2807_v31, %s2638_s24 }
  0x54   : > { %755 = vrot.lane.b32.xlu0 %v2809_v32, %s2638_s24 }
  0x57   : > { %745 = vrot.lane.b32.xlu1 %v2900_v2, %s2638_s24 }
  0x58   : > { %743 = vrot.lane.b32.xlu0 %v2902_v4, %s2638_s24 }
  0x5b   : > { %761 = vrot.lane.b32.xlu1 %v2910_v8, %s2638_s24 }
  0x5c   : > { %759 = vrot.lane.b32.xlu0 %v2912_v9, %s2638_s24 }
  0x5f   : > { %870 = vrot.lane.b32.xlu1 %v2172_v58, %s2639_s27 }
  0x60   : > { %868 = vrot.lane.b32.xlu0 %v2171_v59, %s2639_s27 }
  0x63   : > { %886 = vrot.lane.b32.xlu1 %v2180_v62, %s2639_s27 }
  0x64   : > { %884 = vrot.lane.b32.xlu0 %v2179_v63, %s2639_s27 }
  0x67   : > { %874 = vrot.lane.b32.xlu1 %v2924_v12, %s2639_s27 }
  0x68   : > { %872 = vrot.lane.b32.xlu0 %v2926_v13, %s2639_s27 }
  0x6b   : > { %890 = vrot.lane.b32.xlu1 %v2934_v16, %s2639_s27 }
  0x6c   : > { %888 = vrot.lane.b32.xlu0 %v2936_v17, %s2639_s27 }
  0x6f   : > { %1002 = vrot.lane.b32.xlu1 %v2780_v24, %s2640_s28  ;;  %v2026_v24 = vld [vmem:[%s2742_s10 + $0xb1] sm:$0xff] }
  0x70   : > { %1000 = vrot.lane.b32.xlu0 %v2782_v25, %s2640_s28  ;;  %v2025_v25 = vld [vmem:[%s2742_s10 + $0xa9] sm:$0xff]  ;;  %v2978_v26 = vpack.c.bf16 %v2026_v24, %v2026_v24 }
  0x71   : > { %v2980_v27 = vpack.c.bf16 %v2025_v25, %v2025_v25 }
  0x73   : > { %1018 = vrot.lane.b32.xlu1 %v2788_v28, %s2640_s28  ;;  %v2467_v28 = vld [vmem:[%s3416_s1 + $0x10] ss:$0 sps:$4 sm:$0x33]  }
  0x74   : > { %1016 = vrot.lane.b32.xlu0 %v2790_v29, %s2640_s28  ;;  %2383 = vmatprep.subr.msk.bf16.mxu0 %vm1431_vm2, %v2467_v28  ;;  %v1433_v29 = vsel %vm1431_vm2, %v2467_v28, 0 }
  0x75   : > { %2384 = vmatprep.subr.msk.bf16.mxu1 %vm1431_vm2, %v2467_v28  ;;  %2356 = vmatpush3.bf16.msra.mxu0 %v1433_v29  ;;  %v1932_v28 = vld [vmem:[%s2742_s10 + $0xc9] sm:$0xff] }
  0x76   : > { %2380 = vmatpush3.bf16.msra.mxu1 %v1433_v29  ;;  %2357 = vmatprep.subr.bf16.mxu0 %v2469_v34  ;;  %v1931_v29 = vld [vmem:[%s2742_s10 + $0xc1] sm:$0xff] }
  0x77   : > { %1006 = vrot.lane.b32.xlu1 %v2817_v35, %s2640_s28  ;;  %2378 = vmatprep.subr.bf16.mxu1 %v2469_v34 }
  0x78   : > { %1004 = vrot.lane.b32.xlu0 %v2822_v39, %s2640_s28 }
  0x79   : > { %2358 = vmatpush3.bf16.msra.mxu0 %v2469_v34 }
  0x7a   : > { %2381 = vmatpush3.bf16.msra.mxu1 %v2469_v34  ;;  %2359 = vmatprep.subr.bf16.mxu0 %v2470_v38 }
  0x7b   : > { %1022 = vrot.lane.b32.xlu1 %v2824_v40, %s2640_s28  ;;  %2379 = vmatprep.subr.bf16.mxu1 %v2470_v38 }
  0x7c   : > { %1020 = vrot.lane.b32.xlu0 %v2826_v41, %s2640_s28 }
  0x7d   : > { %2360 = vmatpush3.bf16.msra.mxu0 %v2470_v38 }
  0x7e   : > { %2382 = vmatpush3.bf16.msra.mxu1 %v2470_v38 }
  0x7f   : > { %1131 = vrot.lane.b32.xlu1 %v2900_v2, %s2641_s29 }
  0x80   : > { %1129 = vrot.lane.b32.xlu0 %v2902_v4, %s2641_s29 }
  0x83   : > { %1147 = vrot.lane.b32.xlu1 %v2910_v8, %s2641_s29 }
  0x84   : > { %1145 = vrot.lane.b32.xlu0 %v2912_v9, %s2641_s29 }
  0x87   : > { %1135 = vrot.lane.b32.xlu1 %v2968_v22, %s2641_s29 }
  0x88   : > { %1133 = vrot.lane.b32.xlu0 %v2970_v23, %s2641_s29 }
  0x8b   : > { %1151 = vrot.lane.b32.xlu1 %v2978_v26, %s2641_s29 }
  0x8c   : > { %1149 = vrot.lane.b32.xlu0 %v2980_v27, %s2641_s29 }
  0x8f   : > { %1260 = vrot.lane.b32.xlu1 %v2924_v12, %s2642_s6 }
  0x90   : > { %1258 = vrot.lane.b32.xlu0 %v2926_v13, %s2642_s6 }
  0x91   : > { %v366_v30 = vpop.permute.xlu1 %365 }
  0x92   : > { %v350_v33 = vpop.permute.xlu0 %349  ;;  %406 = vst.msk [vmem:[#allocation2 + $0x20] sm:$0xf] %vm397_vm1, %v366_v30 }
  0x93   : > { %398 = vst.msk [vmem:[#allocation2] sm:$0xf] %vm397_vm1, %v350_v33  ;;  %1276 = vrot.lane.b32.xlu1 %v2934_v16, %s2642_s6 }
  0x94   : > { %1274 = vrot.lane.b32.xlu0 %v2936_v17, %s2642_s6 }
  0x95   : > { %v368_v36 = vpop.permute.xlu1 %367 }
  0x96   : > { %v352_v37 = vpop.permute.xlu0 %351  ;;  %407 = vst.msk [vmem:[#allocation2 + $0x24] sm:$0xf] %vm397_vm1, %v368_v36 }
  0x97   : > { %399 = vst.msk [vmem:[#allocation2 + $0x4] sm:$0xf] %vm397_vm1, %v352_v37  ;;  %359 = vrot.lane.b32.xlu1 %v2900_v2, %s2635_s11 }
  0x98   : > { %357 = vrot.lane.b32.xlu0 %v2902_v4, %s2635_s11 }
  0x99   : > { %v356_v44 = vpop.permute.xlu1 %355 }
  0x9a   : > { %v354_v45 = vpop.permute.xlu0 %353  ;;  %401 = vst.msk [vmem:[#allocation2 + $0xc] sm:$0xf] %vm397_vm1, %v356_v44 }
  0x9b   : > { %400 = vst.msk [vmem:[#allocation2 + $0x8] sm:$0xf] %vm397_vm1, %v354_v45  ;;  %375 = vrot.lane.b32.xlu1 %v2910_v8, %s2635_s11 }
  0x9c   : > { %373 = vrot.lane.b32.xlu0 %v2912_v9, %s2635_s11 }
  0x9d   : > { %v372_v51 = vpop.permute.xlu1 %371 }
  0x9e   : > { %v370_v53 = vpop.permute.xlu0 %369  ;;  %409 = vst.msk [vmem:[#allocation2 + $0x2c] sm:$0xf] %vm397_vm1, %v372_v51 }
  0x9f   : > { %408 = vst.msk [vmem:[#allocation2 + $0x28] sm:$0xf] %vm397_vm1, %v370_v53  ;;  %1264 = vrot.lane.b32.xlu1 %v3019_v47, %s2642_s6 }
  0xa0   : > { %1262 = vrot.lane.b32.xlu0 %v3021_v48, %s2642_s6 }
  0xa1   : > { %v481_v58 = vpop.permute.xlu1 %480 }
  0xa2   : > { %v479_v59 = vpop.permute.xlu0 %478  ;;  %528 = vst.msk [vmem:[#allocation2 + $0x4] sm:$0xf] %vm526_vm3, %v481_v58 }
  0xa3   : > { %527 = vst.msk [vmem:[#allocation2] sm:$0xf] %vm526_vm3, %v479_v59  ;;  %1280 = vrot.lane.b32.xlu1 %v3031_v56, %s2642_s6 }
  0xa4   : > { %1278 = vrot.lane.b32.xlu0 %v3033_v57, %s2642_s6 }
  0xa5   : > { %v497_v60 = vpop.permute.xlu1 %496 }
  0xa6   : > { %v495_v61 = vpop.permute.xlu0 %494  ;;  %536 = vst.msk [vmem:[#allocation2 + $0x24] sm:$0xf] %vm526_vm3, %v497_v60 }
  0xa7   : > { %535 = vst.msk [vmem:[#allocation2 + $0x20] sm:$0xf] %vm526_vm3, %v495_v61  ;;  %363 = vrot.lane.b32.xlu1 %v2968_v22, %s2635_s11 }
  0xa8   : > { %361 = vrot.lane.b32.xlu0 %v2970_v23, %s2635_s11 }
  0xa9   : > { %v485_v62 = vpop.permute.xlu1 %484 }
  0xaa   : > { %v483_v63 = vpop.permute.xlu0 %482  ;;  %530 = vst.msk [vmem:[#allocation2 + $0xc] sm:$0xf] %vm526_vm3, %v485_v62 }
  0xab   : > { %529 = vst.msk [vmem:[#allocation2 + $0x8] sm:$0xf] %vm526_vm3, %v483_v63  ;;  %379 = vrot.lane.b32.xlu1 %v2978_v26, %s2635_s11 }
  0xac   : > { %377 = vrot.lane.b32.xlu0 %v2980_v27, %s2635_s11 }
  0xad   : > { %v501_v0 = vpop.permute.xlu1 %500 }
  0xae   : > { %v499_v1 = vpop.permute.xlu0 %498  ;;  %538 = vst.msk [vmem:[#allocation2 + $0x2c] sm:$0xf] %vm526_vm3, %v501_v0  ;;  %v2030_v0 = vld [vmem:[%s2742_s10 + $0xe1] sm:$0xff] }
  0xaf   : > { %537 = vst.msk [vmem:[#allocation2 + $0x28] sm:$0xf] %vm526_vm3, %v499_v1  ;;  %488 = vrot.lane.b32.xlu1 %v2924_v12, %s2636_s20 }
  0xb0   : > { %486 = vrot.lane.b32.xlu0 %v2926_v13, %s2636_s20 }
  0xb1   : > { %v613_v2 = vpop.permute.xlu1 %612 }
  0xb2   : > { %v611_v4 = vpop.permute.xlu0 %610  ;;  %660 = vst.msk [vmem:[#allocation2 + $0x4] sm:$0xf] %vm658_vm4, %v613_v2 }
  0xb3   : > { %659 = vst.msk [vmem:[#allocation2] sm:$0xf] %vm658_vm4, %v611_v4  ;;  %504 = vrot.lane.b32.xlu1 %v2934_v16, %s2636_s20 }
  0xb4   : > { %502 = vrot.lane.b32.xlu0 %v2936_v17, %s2636_s20 }
  0xb5   : > { %v629_v5 = vpop.permute.xlu1 %628 }
  0xb6   : > { %v627_v7 = vpop.permute.xlu0 %626  ;;  %668 = vst.msk [vmem:[#allocation2 + $0x24] sm:$0xf] %vm658_vm4, %v629_v5  ;;  %v2052_v5 = vld [vmem:[%s2742_s10 + $0x6a] sm:$0xff] }
  0xb7   : > { %667 = vst.msk [vmem:[#allocation2 + $0x20] sm:$0xf] %vm658_vm4, %v627_v7  ;;  %492 = vrot.lane.b32.xlu1 %v3019_v47, %s2636_s20  ;;  %v2051_v7 = vld [vmem:[%s2742_s10 + $0x62] sm:$0xff] }
  0xb8   : > { %490 = vrot.lane.b32.xlu0 %v3021_v48, %s2636_s20 }
  0xb9   : > { %v617_v8 = vpop.permute.xlu1 %616 }
  0xba   : > { %v615_v9 = vpop.permute.xlu0 %614  ;;  %662 = vst.msk [vmem:[#allocation2 + $0xc] sm:$0xf] %vm658_vm4, %v617_v8 }
  0xbb   : > { %661 = vst.msk [vmem:[#allocation2 + $0x8] sm:$0xf] %vm658_vm4, %v615_v9  ;;  %508 = vrot.lane.b32.xlu1 %v3031_v56, %s2636_s20 }
  0xbc   : > { %506 = vrot.lane.b32.xlu0 %v3033_v57, %s2636_s20 }
  0xbd   : > { %v633_v10 = vpop.permute.xlu1 %632 }
  0xbe   : > { %v631_v11 = vpop.permute.xlu0 %630  ;;  %670 = vst.msk [vmem:[#allocation2 + $0x2c] sm:$0xf] %vm658_vm4, %v633_v10 }
  0xbf   : > { %669 = vst.msk [vmem:[#allocation2 + $0x28] sm:$0xf] %vm658_vm4, %v631_v11  ;;  %620 = vrot.lane.b32.xlu1 %v2817_v35, %s2637_s21 }
  0xc0   : > { %618 = vrot.lane.b32.xlu0 %v2822_v39, %s2637_s21  ;;  %v3097_v39 = vpack.c.bf16 %v1900_v14, %v1900_v14  ;;  %v2054_v14 = vld [vmem:[%s2742_s10 + $0x82] sm:$0xff] }
  0xc1   : > { %v742_v12 = vpop.permute.xlu1 %741 }
  0xc2   : > { %v740_v13 = vpop.permute.xlu0 %739  ;;  %789 = vst.msk [vmem:[#allocation2 + $0x4] sm:$0xf] %vm787_vm5, %v742_v12 }
  0xc3   : > { %788 = vst.msk [vmem:[#allocation2] sm:$0xf] %vm787_vm5, %v740_v13  ;;  %636 = vrot.lane.b32.xlu1 %v2824_v40, %s2637_s21  ;;  %v3099_v40 = vpack.c.bf16 %v1899_v15, %v1899_v15  ;;  %v2053_v15 = vld [vmem:[%s2742_s10 + $0x7a] sm:$0xff] }
  0xc4   : > { %634 = vrot.lane.b32.xlu0 %v2826_v41, %s2637_s21 }
  0xc5   : > { %v758_v16 = vpop.permute.xlu1 %757 }
  0xc6   : > { %v756_v35 = vpop.permute.xlu0 %755  ;;  %797 = vst.msk [vmem:[#allocation2 + $0x24] sm:$0xf] %vm787_vm5, %v758_v16 }
  0xc7   : > { %796 = vst.msk [vmem:[#allocation2 + $0x20] sm:$0xf] %vm787_vm5, %v756_v35  ;;  %624 = vrot.lane.b32.xlu1 %v2848_v52, %s2637_s21 }
  0xc8   : > { %622 = vrot.lane.b32.xlu0 %v2836_v46, %s2637_s21 }
  0xc9   : > { %v746_v17 = vpop.permute.xlu1 %745 }
  0xca   : > { %v744_v41 = vpop.permute.xlu0 %743  ;;  %791 = vst.msk [vmem:[#allocation2 + $0xc] sm:$0xf] %vm787_vm5, %v746_v17  ;;  %v2062_v17 = vld [vmem:[%s2742_s10 + $0xe2] sm:$0xff] }
  0xcb   : > { %790 = vst.msk [vmem:[#allocation2 + $0x8] sm:$0xf] %vm787_vm5, %v744_v41  ;;  %640 = vrot.lane.b32.xlu1 %v3097_v39, %s2637_s21  ;;  %v2061_v41 = vld [vmem:[%s2742_s10 + $0xda] sm:$0xff] }
  0xcc   : > { %638 = vrot.lane.b32.xlu0 %v3099_v40, %s2637_s21  ;;  %s175_s21 = sand.u32 1, %s2609_s13  }
  0xcd   : > { %v762_v18 = vpop.permute.xlu1 %761  ;;  %s3363_s9 = scalar_lea.sflag [#allocation4], %s175_s21 }
  0xce   : > { %v760_v21 = vpop.permute.xlu0 %759  ;;  %799 = vst.msk [vmem:[#allocation2 + $0x2c] sm:$0xf] %vm787_vm5, %v762_v18 }
  0xcf   : > { %798 = vst.msk [vmem:[#allocation2 + $0x28] sm:$0xf] %vm787_vm5, %v760_v21  ;;  %749 = vrot.lane.b32.xlu1 %v2968_v22, %s2638_s24 }
  0xd0   : > { %747 = vrot.lane.b32.xlu0 %v2970_v23, %s2638_s24  ;;  %v3127_v23 = vpack.c.bf16 %v1932_v28, %v1932_v28 }
  0xd1   : > { %v871_v24 = vpop.permute.xlu1 %870 }
  0xd2   : > { %v869_v25 = vpop.permute.xlu0 %868  ;;  %918 = vst.msk [vmem:[#allocation2 + $0x4] sm:$0xf] %vm916_vm6, %v871_v24  ;;  %v2280_v24 = vpack.c.bf16 %v2062_v17, %v2062_v17 }
  0xd3   : > { %917 = vst.msk [vmem:[#allocation2] sm:$0xf] %vm916_vm6, %v869_v25  ;;  %765 = vrot.lane.b32.xlu1 %v2978_v26, %s2638_s24  ;;  %v3129_v26 = vpack.c.bf16 %v1931_v29, %v1931_v29  ;;  %v2279_v25 = vpack.c.bf16 %v2061_v41, %v2061_v41 }
  0xd4   : > { %763 = vrot.lane.b32.xlu0 %v2980_v27, %s2638_s24 }
  0xd5   : > { %v887_v30 = vpop.permute.xlu1 %886 }
  0xd6   : > { %v885_v22 = vpop.permute.xlu0 %884  ;;  %926 = vst.msk [vmem:[#allocation2 + $0x24] sm:$0xf] %vm916_vm6, %v887_v30 }
  0xd7   : > { %925 = vst.msk [vmem:[#allocation2 + $0x20] sm:$0xf] %vm916_vm6, %v885_v22  ;;  %753 = vrot.lane.b32.xlu1 %v2753_v6, %s2638_s24 }
  0xd8   : > { %751 = vrot.lane.b32.xlu0 %v2747_v3, %s2638_s24 }
  0xd9   : > { %v875_v33 = vpop.permute.xlu1 %874 }
  0xda   : > { %v873_v27 = vpop.permute.xlu0 %872  ;;  %920 = vst.msk [vmem:[#allocation2 + $0xc] sm:$0xf] %vm916_vm6, %v875_v33 }
  0xdb   : > { %919 = vst.msk [vmem:[#allocation2 + $0x8] sm:$0xf] %vm916_vm6, %v873_v27  ;;  %769 = vrot.lane.b32.xlu1 %v3127_v23, %s2638_s24 }
  0xdc   : > { %767 = vrot.lane.b32.xlu0 %v3129_v26, %s2638_s24  ;;  %s1831_s24 = sshll.u32 %s175_s21, 6 }
  0xdd   : > { %v891_v34 = vpop.permute.xlu1 %890 }
  0xde   : > { %v889_v36 = vpop.permute.xlu0 %888  ;;  %928 = vst.msk [vmem:[#allocation2 + $0x2c] sm:$0xf] %vm916_vm6, %v891_v34 }
  0xdf   : > { %927 = vst.msk [vmem:[#allocation2 + $0x28] sm:$0xf] %vm916_vm6, %v889_v36  ;;  %878 = vrot.lane.b32.xlu1 %v3019_v47, %s2639_s27  ;;  %v3157_v47 = vpack.c.bf16 %v1964_v42, %v1964_v42 }
  0xe0   : > { %876 = vrot.lane.b32.xlu0 %v3021_v48, %s2639_s27  ;;  %v3159_v48 = vpack.c.bf16 %v1963_v43, %v1963_v43 }
  0xe1   : > { %v1003_v37 = vpop.permute.xlu1 %1002 }
  0xe2   : > { %v1001_v38 = vpop.permute.xlu0 %1000  ;;  %1050 = vst.msk [vmem:[#allocation2 + $0x4] sm:$0xf] %vm1048_vm7, %v1003_v37 }
  0xe3   : > { %1049 = vst.msk [vmem:[#allocation2] sm:$0xf] %vm1048_vm7, %v1001_v38  ;;  %894 = vrot.lane.b32.xlu1 %v3031_v56, %s2639_s27  ;;  %v1998_v56 = vld [vmem:[%s2742_s10 + $0xe0] sm:$0xff] }
  0xe4   : > { %892 = vrot.lane.b32.xlu0 %v3033_v57, %s2639_s27  ;;  %v1997_v57 = vld [vmem:[%s2742_s10 + $0xd8] sm:$0xff] }
  0xe5   : > { %v1019_v44 = vpop.permute.xlu1 %1018  ;;  %v2247_v59 = vpack.c.bf16 %v1997_v57, %v1997_v57 }
  0xe6   : > { %v1017_v45 = vpop.permute.xlu0 %1016  ;;  %1058 = vst.msk [vmem:[#allocation2 + $0x24] sm:$0xf] %vm1048_vm7, %v1019_v44 }
  0xe7   : > { %1057 = vst.msk [vmem:[#allocation2 + $0x20] sm:$0xf] %vm1048_vm7, %v1017_v45  ;;  %882 = vrot.lane.b32.xlu1 %v2858_v54, %s2639_s27 }
  0xe8   : > { %880 = vrot.lane.b32.xlu0 %v2860_v55, %s2639_s27 }
  0xe9   : > { %v1007_v49 = vpop.permute.xlu1 %1006 }
  0xea   : > { %v1005_v50 = vpop.permute.xlu0 %1004  ;;  %1052 = vst.msk [vmem:[#allocation2 + $0xc] sm:$0xf] %vm1048_vm7, %v1007_v49 }
  0xeb   : > { %1051 = vst.msk [vmem:[#allocation2 + $0x8] sm:$0xf] %vm1048_vm7, %v1005_v50  ;;  %898 = vrot.lane.b32.xlu1 %v3157_v47, %s2639_s27 }
  0xec   : > { %896 = vrot.lane.b32.xlu0 %v3159_v48, %s2639_s27  ;;  %s3329_s27 = scalar_lea.vmem [#allocation3], %s1831_s24 }
  0xed   : > { %v1023_v54 = vpop.permute.xlu1 %1022 }
  0xee   : > { %v1021_v55 = vpop.permute.xlu0 %1020  ;;  %1060 = vst.msk [vmem:[#allocation2 + $0x2c] sm:$0xf] %vm1048_vm7, %v1023_v54 }
  0xef   : > { %1059 = vst.msk [vmem:[#allocation2 + $0x28] sm:$0xf] %vm1048_vm7, %v1021_v55  ;;  %1010 = vrot.lane.b32.xlu1 %v2848_v52, %s2640_s28 }
  0xf0   : > { %1008 = vrot.lane.b32.xlu0 %v2836_v46, %s2640_s28  ;;  %v2248_v46 = vpack.c.bf16 %v1998_v56, %v1998_v56 }
  0xf1   : > { %v1132_v51 = vpop.permute.xlu1 %1131 }
  0xf2   : > { %v1130_v53 = vpop.permute.xlu0 %1129  ;;  %1179 = vst.msk [vmem:[#allocation2 + $0x4] sm:$0xf] %vm1177_vm8, %v1132_v51 }
  0xf3   : > { %1178 = vst.msk [vmem:[#allocation2] sm:$0xf] %vm1177_vm8, %v1130_v53  ;;  %1026 = vrot.lane.b32.xlu1 %v3097_v39, %s2640_s28  ;;  %v2272_v39 = vpack.c.bf16 %v2054_v14, %v2054_v14 }
  0xf4   : > { %1024 = vrot.lane.b32.xlu0 %v3099_v40, %s2640_s28  ;;  %v2271_v40 = vpack.c.bf16 %v2053_v15, %v2053_v15 }
  0xf5   : > { %v1148_v58 = vpop.permute.xlu1 %1147 }
  0xf6   : > { %v1146_v52 = vpop.permute.xlu0 %1145  ;;  %1187 = vst.msk [vmem:[#allocation2 + $0x24] sm:$0xf] %vm1177_vm8, %v1148_v58 }
  0xf7   : > { %1186 = vst.msk [vmem:[#allocation2 + $0x20] sm:$0xf] %vm1177_vm8, %v1146_v52  ;;  %1014 = vrot.lane.b32.xlu1 %v2773_v19, %s2640_s28 }
  0xf8   : > { %1012 = vrot.lane.b32.xlu0 %v2775_v20, %s2640_s28 }
  0xf9   : > { %v1136_v60 = vpop.permute.xlu1 %1135 }
  0xfa   : > { %v1134_v61 = vpop.permute.xlu0 %1133  ;;  %1181 = vst.msk [vmem:[#allocation2 + $0xc] sm:$0xf] %vm1177_vm8, %v1136_v60 }
  0xfb   : > { %1180 = vst.msk [vmem:[#allocation2 + $0x8] sm:$0xf] %vm1177_vm8, %v1134_v61  ;;  %1030 = vrot.lane.b32.xlu1 %v2248_v46, %s2640_s28 }
  0xfc   : > { %1028 = vrot.lane.b32.xlu0 %v2247_v59, %s2640_s28  ;;  %s2132_s28 = sshll.u32 %s2617_s15, 4 }
  0xfd   : > { %v1152_v62 = vpop.permute.xlu1 %1151 }
  0xfe   : > { %v1150_v63 = vpop.permute.xlu0 %1149  ;;  %1189 = vst.msk [vmem:[#allocation2 + $0x2c] sm:$0xf] %vm1177_vm8, %v1152_v62 }
  0xff   : > { %1188 = vst.msk [vmem:[#allocation2 + $0x28] sm:$0xf] %vm1177_vm8, %v1150_v63  ;;  %1139 = vrot.lane.b32.xlu1 %v2753_v6, %s2641_s29  ;;  %v2029_v6 = vld [vmem:[%s2742_s10 + $0xd9] sm:$0xff]  ;;  %s2643_s10 = smov [#allocation3]  }
 0x100   : > { %1137 = vrot.lane.b32.xlu0 %v2747_v3, %s2641_s29  ;;  %v2264_v3 = vpack.c.bf16 %v2030_v0, %v2030_v0  ;;  %v2263_v4 = vpack.c.bf16 %v2029_v6, %v2029_v6  ;;  %s2545_s20 = sshll.u32 %s2643_s10, 4  ;;  %s2546_s20 = int_to_ptr.vmem [resolvable:$false] %s2545_s20 }
 0x101   : > { %v1261_v19 = vpop.permute.xlu1 %1260  ;;  %s2547_s24 = scalar_lea.vmem %s2546_s20, 2048 }
 0x102   : > { %v1259_v20 = vpop.permute.xlu0 %1258  ;;  %1308 = vst.msk [vmem:[#allocation2 + $0x4] sm:$0xf] %vm1306_vm9, %v1261_v19 }
 0x103   : > { %1307 = vst.msk [vmem:[#allocation2] sm:$0xf] %vm1306_vm9, %v1259_v20  ;;  %1155 = vrot.lane.b32.xlu1 %v3127_v23, %s2641_s29 }
 0x104   : > { %1153 = vrot.lane.b32.xlu0 %v3129_v26, %s2641_s29 }
 0x105   : > { %v1277_v1 = vpop.permute.xlu1 %1276 }
 0x106   : > { %v1275_v2 = vpop.permute.xlu0 %1274  ;;  %1316 = vst.msk [vmem:[#allocation2 + $0x24] sm:$0xf] %vm1306_vm9, %v1277_v1 }
 0x107   : > { %1315 = vst.msk [vmem:[#allocation2 + $0x20] sm:$0xf] %vm1306_vm9, %v1275_v2  ;;  %1143 = vrot.lane.b32.xlu1 %v2807_v31, %s2641_s29  ;;  %v2270_v31 = vpack.c.bf16 %v2052_v5, %v2052_v5 }
 0x108   : > { %1141 = vrot.lane.b32.xlu0 %v2809_v32, %s2641_s29  ;;  %v2269_v32 = vpack.c.bf16 %v2051_v7, %v2051_v7 }
 0x109   : > { %v360_v8 = vpop.permute.xlu1 %359 }
 0x10a   : > { %v358_v9 = vpop.permute.xlu0 %357  ;;  %v2466_v10 = vld [vmem:[#allocation2] sm:$0xff]   ;;  %403 = vst.msk [vmem:[#allocation2 + $0x14] sm:$0xf] %vm397_vm1, %v360_v8 }
 0x10b   : > { %402 = vst.msk [vmem:[#allocation2 + $0x10] sm:$0xf] %vm397_vm1, %v358_v9  ;;  %1159 = vrot.lane.b32.xlu1 %v2264_v3, %s2641_s29  ;;  %2361 = vmatprep.mubr.msk.bf16.mxu0 %vm1406_vm10, %v2466_v10 }
 0x10c   : > { %1157 = vrot.lane.b32.xlu0 %v2263_v4, %s2641_s29  ;;  %s2133_s29 = sshll.u32 %s2621_s16, 5  ;;  %s1740_s16 = sshll.u32 %s3329_s27, 4  ;;  %s3358_s16 = int_to_ptr.vmem [resolvable:$true] %s1740_s16 }
 0x10d   : > { %v376_v11 = vpop.permute.xlu1 %375  ;;  %s1737_s5 = sadd.s32 %s2133_s29, %s2132_s28  ;;  %s2541_s4 = scalar_lea.vmem %s3358_s16, 1024 }
 0x10e   : > { %v374_v12 = vpop.permute.xlu0 %373  ;;  %v2468_v13 = vld [vmem:[#allocation2 + $0x20] sm:$0xff]   ;;  %411 = vst.msk [vmem:[#allocation2 + $0x34] sm:$0xf] %vm397_vm1, %v376_v11  ;;  %s2134_s15 = sshll.u32 %s1737_s5, 6  ;;  %p2542_p13 = scmp.ne.s32.totalorder %s3358_s16, %s2541_s4 }
 0x10f   : > { %410 = vst.msk [vmem:[#allocation2 + $0x30] sm:$0xf] %vm397_vm1, %v374_v12  ;;  %1268 = vrot.lane.b32.xlu1 %v2270_v31, %s2642_s6  ;;  %2369 = vmatprep.mubr.msk.bf16.mxu1 %vm1406_vm10, %v2468_v13  ;;  %s3355_s8 = scalar_lea.hbm %s3418_s3, %s2134_s15  ;;  %p2548_p2 = scmp.lt.s32.totalorder %s3358_s16, %s2546_s20 }
 0x110   : > { %1266 = vrot.lane.b32.xlu0 %v2269_v32, %s2642_s6  ;;  %p2543_p0 = pnand %p2542_p13, %p2716_p3  ;;  %p2549_p4 = scmp.lt.s32.totalorder %s2547_s24, %s2541_s4 }
 0x111   : > { %v1265_v16 = vpop.permute.xlu1 %1264 }
 0x112   : > { %v1263_v35 = vpop.permute.xlu0 %1262  ;;  %1310 = vst.msk [vmem:[#allocation2 + $0xc] sm:$0xf] %vm1306_vm9, %v1265_v16  ;;  %p2544_p1 = pneg %p2543_p0  ;;  %p2550_p5 = por %p2549_p4, %p2548_p2 }
 0x113   : > { %1309 = vst.msk [vmem:[#allocation2 + $0x8] sm:$0xf] %vm1306_vm9, %v1263_v35  ;;  %1284 = vrot.lane.b32.xlu1 %v3157_v47, %s2642_s6 }
 0x114   : > { %1282 = vrot.lane.b32.xlu0 %v3159_v48, %s2642_s6  ;;  %p2551_p6 = pnand %p2550_p5, %p2544_p1 }
 0x115   : > { %v1281_v18 = vpop.permute.xlu1 %1280 }
 0x116   : > { %v1279_v21 = vpop.permute.xlu0 %1278  ;;  %1318 = vst.msk [vmem:[#allocation2 + $0x2c] sm:$0xf] %vm1306_vm9, %v1281_v18 }
 0x117   : > { %1317 = vst.msk [vmem:[#allocation2 + $0x28] sm:$0xf] %vm1306_vm9, %v1279_v21  ;;  %1272 = vrot.lane.b32.xlu1 %v2272_v39, %s2642_s6 }
 0x118   : > { %1270 = vrot.lane.b32.xlu0 %v2271_v40, %s2642_s6 }
 0x119   : > { %v364_v28 = vpop.permute.xlu1 %363 }
 0x11a   : > { %v362_v29 = vpop.permute.xlu0 %361  ;;  %v2471_v30 = vld [vmem:[#allocation2 + $0x8] sm:$0xff]   ;;  %405 = vst.msk [vmem:[#allocation2 + $0x1c] sm:$0xf] %vm397_vm1, %v364_v28 }
 0x11b   : > { %404 = vst.msk [vmem:[#allocation2 + $0x18] sm:$0xf] %vm397_vm1, %v362_v29  ;;  %1288 = vrot.lane.b32.xlu1 %v2280_v24, %s2642_s6  ;;  %2362 = vmatmul.mubr.msk.bf16.vlgmr.msra.gmra.mxu0 %vm1406_vm10, %v2471_v30  ;;  %v3308_v30 = vld [vmem:[%s3417_s2] ss:$0 sm:$0xff] }
 0x11c   : > { %1286 = vrot.lane.b32.xlu0 %v2279_v25, %s2642_s6 }
 0x11d   : > { %v380_v22 = vpop.permute.xlu1 %379 }
 0x11e   : > { %v378_v23 = vpop.permute.xlu0 %377  ;;  %v2472_v26 = vld [vmem:[#allocation2 + $0x28] sm:$0xff]   ;;  %413 = vst.msk [vmem:[#allocation2 + $0x3c] sm:$0xf] %vm397_vm1, %v380_v22 }
 0x11f   : > { %412 = vst.msk [vmem:[#allocation2 + $0x38] sm:$0xf] %vm397_vm1, %v378_v23  ;;  %2370 = vmatmul.mubr.msk.bf16.vlgmr.msra.gmra.mxu1 %vm1406_vm10, %v2472_v26 }
 0x121   : > { %v489_v33 = vpop.permute.xlu1 %488 }
 0x122   : > { %v487_v27 = vpop.permute.xlu0 %486  ;;  %532 = vst.msk [vmem:[#allocation2 + $0x14] sm:$0xf] %vm526_vm3, %v489_v33 }
 0x123   : > { %531 = vst.msk [vmem:[#allocation2 + $0x10] sm:$0xf] %vm526_vm3, %v487_v27 }
 0x125   : > { %v505_v34 = vpop.permute.xlu1 %504 }
 0x126   : > { %v503_v36 = vpop.permute.xlu0 %502  ;;  %540 = vst.msk [vmem:[#allocation2 + $0x34] sm:$0xf] %vm526_vm3, %v505_v34 }
 0x127   : > { %539 = vst.msk [vmem:[#allocation2 + $0x30] sm:$0xf] %vm526_vm3, %v503_v36 }
 0x129   : > { %v493_v37 = vpop.permute.xlu1 %492 }
 0x12a   : > { %v491_v38 = vpop.permute.xlu0 %490  ;;  %534 = vst.msk [vmem:[#allocation2 + $0x1c] sm:$0xf] %vm526_vm3, %v493_v37 }
 0x12b   : > { %533 = vst.msk [vmem:[#allocation2 + $0x18] sm:$0xf] %vm526_vm3, %v491_v38 }
 0x12d   : > { %v509_v42 = vpop.permute.xlu1 %508 }
 0x12e   : > { %v507_v43 = vpop.permute.xlu0 %506  ;;  %542 = vst.msk [vmem:[#allocation2 + $0x3c] sm:$0xf] %vm526_vm3, %v509_v42 }
 0x12f   : > { %541 = vst.msk [vmem:[#allocation2 + $0x38] sm:$0xf] %vm526_vm3, %v507_v43 }
 0x131   : > { %v621_v44 = vpop.permute.xlu1 %620 }
 0x132   : > { %v619_v45 = vpop.permute.xlu0 %618  ;;  %664 = vst.msk [vmem:[#allocation2 + $0x14] sm:$0xf] %vm658_vm4, %v621_v44 }
 0x133   : > { %663 = vst.msk [vmem:[#allocation2 + $0x10] sm:$0xf] %vm658_vm4, %v619_v45 }
 0x135   : > { %v637_v47 = vpop.permute.xlu1 %636 }
 0x136   : > { %v635_v48 = vpop.permute.xlu0 %634  ;;  %672 = vst.msk [vmem:[#allocation2 + $0x34] sm:$0xf] %vm658_vm4, %v637_v47 }
 0x137   : > { %671 = vst.msk [vmem:[#allocation2 + $0x30] sm:$0xf] %vm658_vm4, %v635_v48 }
 0x139   : > { %v625_v49 = vpop.permute.xlu1 %624 }
 0x13a   : > { %v623_v50 = vpop.permute.xlu0 %622  ;;  %666 = vst.msk [vmem:[#allocation2 + $0x1c] sm:$0xf] %vm658_vm4, %v625_v49 }
 0x13b   : > { %665 = vst.msk [vmem:[#allocation2 + $0x18] sm:$0xf] %vm658_vm4, %v623_v50 }
 0x13d   : > { %v641_v54 = vpop.permute.xlu1 %640 }
 0x13e   : > { %v639_v55 = vpop.permute.xlu0 %638  ;;  %674 = vst.msk [vmem:[#allocation2 + $0x3c] sm:$0xf] %vm658_vm4, %v641_v54 }
 0x13f   : > { %673 = vst.msk [vmem:[#allocation2 + $0x38] sm:$0xf] %vm658_vm4, %v639_v55 }
 0x141   : > { %v750_v51 = vpop.permute.xlu1 %749 }
 0x142   : > { %v748_v53 = vpop.permute.xlu0 %747  ;;  %793 = vst.msk [vmem:[#allocation2 + $0x14] sm:$0xf] %vm787_vm5, %v750_v51 }
 0x143   : > { %792 = vst.msk [vmem:[#allocation2 + $0x10] sm:$0xf] %vm787_vm5, %v748_v53 }
 0x145   : > { %v766_v56 = vpop.permute.xlu1 %765 }
 0x146   : > { %v764_v57 = vpop.permute.xlu0 %763  ;;  %801 = vst.msk [vmem:[#allocation2 + $0x34] sm:$0xf] %vm787_vm5, %v766_v56 }
 0x147   : > { %800 = vst.msk [vmem:[#allocation2 + $0x30] sm:$0xf] %vm787_vm5, %v764_v57 }
 0x149   : > { %v754_v58 = vpop.permute.xlu1 %753 }
 0x14a   : > { %v752_v52 = vpop.permute.xlu0 %751  ;;  %795 = vst.msk [vmem:[#allocation2 + $0x1c] sm:$0xf] %vm787_vm5, %v754_v58 }
 0x14b   : > { %794 = vst.msk [vmem:[#allocation2 + $0x18] sm:$0xf] %vm787_vm5, %v752_v52 }
 0x14d   : > { %v770_v46 = vpop.permute.xlu1 %769 }
 0x14e   : > { %v768_v59 = vpop.permute.xlu0 %767  ;;  %803 = vst.msk [vmem:[#allocation2 + $0x3c] sm:$0xf] %vm787_vm5, %v770_v46 }
 0x14f   : > { %802 = vst.msk [vmem:[#allocation2 + $0x38] sm:$0xf] %vm787_vm5, %v768_v59 }
 0x151   : > { %v879_v60 = vpop.permute.xlu1 %878 }
 0x152   : > { %v877_v61 = vpop.permute.xlu0 %876  ;;  %922 = vst.msk [vmem:[#allocation2 + $0x14] sm:$0xf] %vm916_vm6, %v879_v60 }
 0x153   : > { %921 = vst.msk [vmem:[#allocation2 + $0x10] sm:$0xf] %vm916_vm6, %v877_v61 }
 0x155   : > { %v895_v62 = vpop.permute.xlu1 %894 }
 0x156   : > { %v893_v63 = vpop.permute.xlu0 %892  ;;  %930 = vst.msk [vmem:[#allocation2 + $0x34] sm:$0xf] %vm916_vm6, %v895_v62 }
 0x157   : > { %929 = vst.msk [vmem:[#allocation2 + $0x30] sm:$0xf] %vm916_vm6, %v893_v63 }
 0x159   : > { %v883_v19 = vpop.permute.xlu1 %882 }
 0x15a   : > { %v881_v20 = vpop.permute.xlu0 %880  ;;  %924 = vst.msk [vmem:[#allocation2 + $0x1c] sm:$0xf] %vm916_vm6, %v883_v19 }
 0x15b   : > { %923 = vst.msk [vmem:[#allocation2 + $0x18] sm:$0xf] %vm916_vm6, %v881_v20 }
 0x15d   : > { %v899_v0 = vpop.permute.xlu1 %898 }
 0x15e   : > { %v897_v6 = vpop.permute.xlu0 %896  ;;  %932 = vst.msk [vmem:[#allocation2 + $0x3c] sm:$0xf] %vm916_vm6, %v899_v0 }
 0x15f   : > { %931 = vst.msk [vmem:[#allocation2 + $0x38] sm:$0xf] %vm916_vm6, %v897_v6 }
 0x161   : > { %v1011_v1 = vpop.permute.xlu1 %1010 }
 0x162   : > { %v1009_v2 = vpop.permute.xlu0 %1008  ;;  %1054 = vst.msk [vmem:[#allocation2 + $0x14] sm:$0xf] %vm1048_vm7, %v1011_v1 }
 0x163   : > { %1053 = vst.msk [vmem:[#allocation2 + $0x10] sm:$0xf] %vm1048_vm7, %v1009_v2 }
 0x165   : > { %v1027_v3 = vpop.permute.xlu1 %1026 }
 0x166   : > { %v1025_v4 = vpop.permute.xlu0 %1024  ;;  %1062 = vst.msk [vmem:[#allocation2 + $0x34] sm:$0xf] %vm1048_vm7, %v1027_v3 }
 0x167   : > { %1061 = vst.msk [vmem:[#allocation2 + $0x30] sm:$0xf] %vm1048_vm7, %v1025_v4 }
 0x169   : > { %v1015_v5 = vpop.permute.xlu1 %1014 }
 0x16a   : > { %v1013_v7 = vpop.permute.xlu0 %1012  ;;  %1056 = vst.msk [vmem:[#allocation2 + $0x1c] sm:$0xf] %vm1048_vm7, %v1015_v5 }
 0x16b   : > { %1055 = vst.msk [vmem:[#allocation2 + $0x18] sm:$0xf] %vm1048_vm7, %v1013_v7 }
 0x16d   : > { %v1031_v8 = vpop.permute.xlu1 %1030 }
 0x16e   : > { %v1029_v9 = vpop.permute.xlu0 %1028  ;;  %1064 = vst.msk [vmem:[#allocation2 + $0x3c] sm:$0xf] %vm1048_vm7, %v1031_v8 }
 0x16f   : > { %1063 = vst.msk [vmem:[#allocation2 + $0x38] sm:$0xf] %vm1048_vm7, %v1029_v9 }
 0x171   : > { %v1140_v10 = vpop.permute.xlu1 %1139 }
 0x172   : > { %v1138_v31 = vpop.permute.xlu0 %1137  ;;  %1183 = vst.msk [vmem:[#allocation2 + $0x14] sm:$0xf] %vm1177_vm8, %v1140_v10 }
 0x173   : > { %1182 = vst.msk [vmem:[#allocation2 + $0x10] sm:$0xf] %vm1177_vm8, %v1138_v31 }
 0x175   : > { %v1156_v32 = vpop.permute.xlu1 %1155 }
 0x176   : > { %v1154_v11 = vpop.permute.xlu0 %1153  ;;  %1191 = vst.msk [vmem:[#allocation2 + $0x34] sm:$0xf] %vm1177_vm8, %v1156_v32 }
 0x177   : > { %1190 = vst.msk [vmem:[#allocation2 + $0x30] sm:$0xf] %vm1177_vm8, %v1154_v11 }
 0x179   : > { %v1144_v12 = vpop.permute.xlu1 %1143 }
 0x17a   : > { %v1142_v13 = vpop.permute.xlu0 %1141  ;;  %1185 = vst.msk [vmem:[#allocation2 + $0x1c] sm:$0xf] %vm1177_vm8, %v1144_v12 }
 0x17b   : > { %1184 = vst.msk [vmem:[#allocation2 + $0x18] sm:$0xf] %vm1177_vm8, %v1142_v13 }
 0x17d   : > { %v1160_v14 = vpop.permute.xlu1 %1159 }
 0x17e   : > { %v1158_v15 = vpop.permute.xlu0 %1157  ;;  %1193 = vst.msk [vmem:[#allocation2 + $0x3c] sm:$0xf] %vm1177_vm8, %v1160_v14 }
 0x17f   : > { %1192 = vst.msk [vmem:[#allocation2 + $0x38] sm:$0xf] %vm1177_vm8, %v1158_v15 }
 0x181   : > { %v1269_v16 = vpop.permute.xlu1 %1268 }
 0x182   : > { %v1267_v35 = vpop.permute.xlu0 %1266  ;;  %1312 = vst.msk [vmem:[#allocation2 + $0x14] sm:$0xf] %vm1306_vm9, %v1269_v16 }
 0x183   : > { %1311 = vst.msk [vmem:[#allocation2 + $0x10] sm:$0xf] %vm1306_vm9, %v1267_v35 }
 0x185   : > { %v1285_v39 = vpop.permute.xlu1 %1284 }
 0x186   : > { %v1283_v40 = vpop.permute.xlu0 %1282  ;;  %1320 = vst.msk [vmem:[#allocation2 + $0x34] sm:$0xf] %vm1306_vm9, %v1285_v39 }
 0x187   : > { %1319 = vst.msk [vmem:[#allocation2 + $0x30] sm:$0xf] %vm1306_vm9, %v1283_v40 }
 0x189   : > { %v1273_v17 = vpop.permute.xlu1 %1272 }
 0x18a   : > { %v1271_v41 = vpop.permute.xlu0 %1270  ;;  %v2473_v18 = vld [vmem:[#allocation2 + $0x10] sm:$0xff]   ;;  %1314 = vst.msk [vmem:[#allocation2 + $0x1c] sm:$0xf] %vm1306_vm9, %v1273_v17 }
 0x18b   : > { %1313 = vst.msk [vmem:[#allocation2 + $0x18] sm:$0xf] %vm1306_vm9, %v1271_v41  ;;  %2365 = vmatprep.mubr.msk.bf16.mxu0 %vm1406_vm10, %v2473_v18 }
 0x18d   : > { %v1289_v21 = vpop.permute.xlu1 %1288 }
 0x18e   : > { %v1287_v24 = vpop.permute.xlu0 %1286  ;;  %v2474_v25 = vld [vmem:[#allocation2 + $0x30] sm:$0xff]   ;;  %1322 = vst.msk [vmem:[#allocation2 + $0x3c] sm:$0xf] %vm1306_vm9, %v1289_v21 }
 0x18f   : > { %1321 = vst.msk [vmem:[#allocation2 + $0x38] sm:$0xf] %vm1306_vm9, %v1287_v24  ;;  %2373 = vmatprep.mubr.msk.bf16.mxu1 %vm1406_vm10, %v2474_v25 }
 0x192   : > { %v2475_v28 = vld [vmem:[#allocation2 + $0x18] sm:$0xff]  }
 0x193   : > { %2366 = vmatmul.mubr.msk.bf16.gmra.mxu0 %vm1406_vm10, %v2475_v28 }
 0x196   : > { %v2476_v29 = vld [vmem:[#allocation2 + $0x38] sm:$0xff]  }
 0x197   : > { %2374 = vmatmul.mubr.msk.bf16.gmra.mxu1 %vm1406_vm10, %v2476_v29 }
 0x1db   : > { %v2363_v22 = vpop.f32.mrf.mxu0 }
 0x1dc   : > { %v1478_v23 = vadd.f32 %v2363_v22, %v3308_v30 }
 0x1dd   : > { %v1469_v26 = vpop.f32.mrf.mxu0 }
 0x1de   : > { %v2101_v33 = vmul.f32 -1.442695, %v1478_v23  ;;  %v3312_v27 = vadd.f32 %v3308_v30, %v1469_v26 }
 0x1df   : > { %v2371_v34 = vpop.f32.mrf.mxu1  ;;  %v2364_v36 = vpop.f32.mrf.mxu0 }
 0x1e0   : > { %v3315_v37 = vadd.f32 %v2371_v34, %v3308_v30  ;;  %2477 = vpow2.f32 %v2101_v33  ;;  %v2099_v38 = vmul.f32 -1.442695, %v3312_v27  ;;  %v1481_v42 = vadd.f32 %v2364_v36, %v3308_v30 }
 0x1e1   : > { %v1501_v43 = vpop.f32.mrf.mxu1  ;;  %v1472_v45 = vpop.f32.mrf.mxu0 }
 0x1e2   : > { %v2109_v44 = vmul.f32 -1.442695, %v3315_v37  ;;  %v1502_v47 = vadd.f32 %v3308_v30, %v1501_v43  ;;  %2479 = vpow2.f32 %v2099_v38  ;;  %v2102_v48 = vmul.f32 -1.442695, %v1481_v42 }
 0x1e3   : > { %v1473_v49 = vadd.f32 %v3308_v30, %v1472_v45  ;;  %v2372_v50 = vpop.f32.mrf.mxu1 }
 0x1e4   : > { %2481 = vpow2.f32 %v2109_v44  ;;  %v2107_v54 = vmul.f32 -1.442695, %v1502_v47  ;;  %v1513_v55 = vadd.f32 %v2372_v50, %v3308_v30 }
 0x1e5   : > { %2483 = vpow2.f32 %v2102_v48  ;;  %v2100_v51 = vmul.f32 -1.442695, %v1473_v49  ;;  %v1504_v53 = vpop.f32.mrf.mxu1 }
 0x1e6   : > { %2485 = vpow2.f32 %v2107_v54  ;;  %v2110_v56 = vmul.f32 -1.442695, %v1513_v55  ;;  %v1505_v57 = vadd.f32 %v3308_v30, %v1504_v53 }
 0x1e7   : > { %2487 = vpow2.f32 %v2100_v51 }
 0x1e8   : > { %2489 = vpow2.f32 %v2110_v56  ;;  %v2108_v58 = vmul.f32 -1.442695, %v1505_v57 }
 0x1ea   : > { %2491 = vpow2.f32 %v2108_v58 }
 0x1ed   : > { %v2478_v52 = vpop.eup %2477 }
 0x1ee   : > { %v1582_v46 = vadd.f32 1.0, %v2478_v52 }
 0x1ef   : > { %v2480_v59 = vpop.eup %2479 }
 0x1f0   : > { %v1580_v61 = vadd.f32 1.0, %v2480_v59  ;;  %2493 = vrcp.f32 %v1582_v46 }
 0x1f1   : > { %v2482_v60 = vpop.eup %2481 }
 0x1f2   : > { %v2484_v62 = vpop.eup %2483  ;;  %v1590_v63 = vadd.f32 1.0, %v2482_v60  ;;  %2495 = vrcp.f32 %v1580_v61 }
 0x1f3   : > { %v2486_v19 = vpop.eup %2485  ;;  %v1583_v20 = vadd.f32 1.0, %v2484_v62 }
 0x1f4   : > { %v2488_v0 = vpop.eup %2487  ;;  %2497 = vrcp.f32 %v1590_v63  ;;  %v1588_v6 = vadd.f32 1.0, %v2486_v19 }
 0x1f5   : > { %v2490_v1 = vpop.eup %2489  ;;  %2499 = vrcp.f32 %v1583_v20  ;;  %v1581_v2 = vadd.f32 1.0, %v2488_v0 }
 0x1f6   : > { %2501 = vrcp.f32 %v1588_v6  ;;  %v1591_v3 = vadd.f32 1.0, %v2490_v1 }
 0x1f7   : > { %v2492_v4 = vpop.eup %2491  ;;  %2503 = vrcp.f32 %v1581_v2 }
 0x1f8   : > { %2505 = vrcp.f32 %v1591_v3  ;;  %v1589_v5 = vadd.f32 1.0, %v2492_v4 }
 0x1fa   : > { %2507 = vrcp.f32 %v1589_v5 }
 0x1fd   : > { %v2494_v7 = vpop.eup %2493 }
 0x1fe   : > { %v1630_v32 = vmul.f32 %v2494_v7, %v1478_v23 }
 0x1ff   : > { %v2496_v8 = vpop.eup %2495 }
 0x200   : > { %v1628_v14 = vmul.f32 %v2496_v8, %v3312_v27 }
 0x201   : > { %v2498_v9 = vpop.eup %2497 }
 0x202   : > { %v2500_v10 = vpop.eup %2499  ;;  %v1638_v35 = vmul.f32 %v2498_v9, %v3315_v37 }
 0x203   : > { %v2502_v31 = vpop.eup %2501  ;;  %v1631_v11 = vmul.f32 %v2500_v10, %v1481_v42 }
 0x204   : > { %v2504_v12 = vpop.eup %2503  ;;  %v1636_v41 = vmul.f32 %v2502_v31, %v1502_v47 }
 0x205   : > { %v2506_v13 = vpop.eup %2505  ;;  %v2305_v15 = vpack.c.bf16 %v1631_v11, %v1630_v32  ;;  %v1629_v16 = vmul.f32 %v2504_v12, %v1473_v49 }
 0x206   : > { %v1639_v39 = vmul.f32 %v2506_v13, %v1513_v55 }
 0x207   : > { %v2508_v40 = vpop.eup %2507  ;;  %2337 = vst [vmem:[%s3329_s27 + $0x8] sm:$0xff] %v2305_v15   ;;  %v2300_v17 = vpack.c.bf16 %v1629_v16, %v1628_v14 }
 0x208   : > { %v2325_v18 = vpack.c.bf16 %v1639_v39, %v1638_v35  ;;  %v1637_v21 = vmul.f32 %v2508_v40, %v1505_v57 }
 0x209   : > { %2301 = vst [vmem:[%s3329_s27] sm:$0xff] %v2300_v17  }
 0x20a   : > { %2341 = vst [vmem:[%s3329_s27 + $0x28] sm:$0xff] %v2325_v18   ;;  %v2320_v24 = vpack.c.bf16 %v1637_v21, %v1636_v41 }
 0x20c   : > { %2340 = vst [vmem:[%s3329_s27 + $0x20] sm:$0xff] %v2320_v24  }
 0x253   : > { %v2367_v25 = vpop.f32.mrf.mxu0 }
 0x254   : > { %v1494_v28 = vadd.f32 %v2367_v25, %v3308_v30 }
 0x255   : > { %v1485_v29 = vpop.f32.mrf.mxu0 }
 0x256   : > { %v2105_v22 = vmul.f32 -1.442695, %v1494_v28  ;;  %v3337_v23 = vadd.f32 %v3308_v30, %v1485_v29 }
 0x257   : > { %v2368_v26 = vpop.f32.mrf.mxu0  ;;  %v2375_v33 = vpop.f32.mrf.mxu1 }
 0x258   : > { %2509 = vpow2.f32 %v2105_v22  ;;  %v2103_v27 = vmul.f32 -1.442695, %v3337_v23  ;;  %v1497_v34 = vadd.f32 %v2368_v26, %v3308_v30  ;;  %v1526_v36 = vadd.f32 %v2375_v33, %v3308_v30 }
 0x259   : > { %v1488_v37 = vpop.f32.mrf.mxu0  ;;  %v1517_v38 = vpop.f32.mrf.mxu1 }
 0x25a   : > { %2511 = vpow2.f32 %v2103_v27  ;;  %v2106_v42 = vmul.f32 -1.442695, %v1497_v34  ;;  %v2113_v43 = vmul.f32 -1.442695, %v1526_v36  ;;  %v1489_v44 = vadd.f32 %v3308_v30, %v1488_v37 }
 0x25b   : > { %v1518_v45 = vadd.f32 %v3308_v30, %v1517_v38  ;;  %v2376_v47 = vpop.f32.mrf.mxu1 }
 0x25c   : > { %2513 = vpow2.f32 %v2106_v42  ;;  %v2104_v48 = vmul.f32 -1.442695, %v1489_v44  ;;  %v1529_v49 = vadd.f32 %v2376_v47, %v3308_v30 }
 0x25d   : > { %2515 = vpow2.f32 %v2113_v43  ;;  %v2111_v50 = vmul.f32 -1.442695, %v1518_v45  ;;  %v1520_v54 = vpop.f32.mrf.mxu1 }
 0x25e   : > { %2517 = vpow2.f32 %v2104_v48  ;;  %v2114_v55 = vmul.f32 -1.442695, %v1529_v49  ;;  %v1521_v51 = vadd.f32 %v3308_v30, %v1520_v54 }
 0x25f   : > { %2519 = vpow2.f32 %v2111_v50 }
 0x260   : > { %2521 = vpow2.f32 %v2114_v55  ;;  %v2112_v53 = vmul.f32 -1.442695, %v1521_v51 }
 0x262   : > { %2523 = vpow2.f32 %v2112_v53 }
 0x265   : > { %v2510_v56 = vpop.eup %2509 }
 0x266   : > { %v1586_v57 = vadd.f32 1.0, %v2510_v56 }
 0x267   : > { %v2512_v58 = vpop.eup %2511 }
 0x268   : > { %v1584_v52 = vadd.f32 1.0, %v2512_v58  ;;  %2525 = vrcp.f32 %v1586_v57 }
 0x269   : > { %v2514_v46 = vpop.eup %2513 }
 0x26a   : > { %v2516_v59 = vpop.eup %2515  ;;  %v1587_v60 = vadd.f32 1.0, %v2514_v46  ;;  %2527 = vrcp.f32 %v1584_v52 }
 0x26b   : > { %v2518_v61 = vpop.eup %2517  ;;  %v1594_v62 = vadd.f32 1.0, %v2516_v59 }
 0x26c   : > { %v2520_v63 = vpop.eup %2519  ;;  %2529 = vrcp.f32 %v1587_v60  ;;  %v1585_v30 = vadd.f32 1.0, %v2518_v61 }
 0x26d   : > { %v2522_v19 = vpop.eup %2521  ;;  %2531 = vrcp.f32 %v1594_v62  ;;  %v1592_v20 = vadd.f32 1.0, %v2520_v63 }
 0x26e   : > { %2533 = vrcp.f32 %v1585_v30  ;;  %v1595_v0 = vadd.f32 1.0, %v2522_v19 }
 0x26f   : > { %v2524_v6 = vpop.eup %2523  ;;  %2535 = vrcp.f32 %v1592_v20 }
 0x270   : > { %2537 = vrcp.f32 %v1595_v0  ;;  %v1593_v1 = vadd.f32 1.0, %v2524_v6 }
 0x272   : > { %2539 = vrcp.f32 %v1593_v1 }
 0x275   : > { %v2526_v2 = vpop.eup %2525 }
 0x276   : > { %v1634_v7 = vmul.f32 %v2526_v2, %v1494_v28 }
 0x277   : > { %v2528_v3 = vpop.eup %2527 }
 0x278   : > { %v1632_v31 = vmul.f32 %v2528_v3, %v3337_v23 }
 0x279   : > { %v2530_v4 = vpop.eup %2529 }
 0x27a   : > { %v2532_v5 = vpop.eup %2531  ;;  %v1635_v8 = vmul.f32 %v2530_v4, %v1497_v34 }
 0x27b   : > { %v2534_v9 = vpop.eup %2533  ;;  %v1642_v13 = vmul.f32 %v2532_v5, %v1526_v36 }
 0x27c   : > { %v2536_v10 = vpop.eup %2535  ;;  %v2315_v32 = vpack.c.bf16 %v1635_v8, %v1634_v7  ;;  %v1633_v11 = vmul.f32 %v2534_v9, %v1489_v44 }
 0x27d   : > { %v2538_v12 = vpop.eup %2537  ;;  %v1640_v35 = vmul.f32 %v2536_v10, %v1518_v45 }
 0x27e   : > { %2339 = vst [vmem:[%s3329_s27 + $0x18] sm:$0xff] %v2315_v32   ;;  %v2310_v14 = vpack.c.bf16 %v1633_v11, %v1632_v31  ;;  %v1643_v15 = vmul.f32 %v2538_v12, %v1529_v49 }
 0x27f   : > { %v2540_v16 = vpop.eup %2539 }
 0x280   : > { %2338 = vst [vmem:[%s3329_s27 + $0x10] sm:$0xff] %v2310_v14   ;;  %v2335_v39 = vpack.c.bf16 %v1643_v15, %v1642_v13  ;;  %v1641_v40 = vmul.f32 %v2540_v16, %v1521_v51 }
 0x282   : > { %2343 = vst [vmem:[%s3329_s27 + $0x38] sm:$0xff] %v2335_v39   ;;  %v2330_v17 = vpack.c.bf16 %v1641_v40, %v1640_v35 }
 0x284   : > { %2342 = vst [vmem:[%s3329_s27 + $0x30] sm:$0xff] %v2330_v17  }
 0x285   : > { %2554 = shalt.err (!%p2551_p6)
}
 0x286   : > { %s2555_s21 = scalar_lea.hbm %s3355_s8, 1024  ;;  %s2559_s29 = scalar_lea.hbm %s3418_s3, 4096 }
 0x287   : > { %p2556_p7 = scmp.ne.s32.totalorder %s3355_s8, %s2555_s21  ;;  %p2560_p11 = scmp.lt.s32.totalorder %s3355_s8, %s3418_s3 }
 0x288   : > { %p2561_p12 = scmp.lt.s32.totalorder %s2559_s29, %s2555_s21 }
 0x289   : > { %p2557_p9 = pnand %p2556_p7, %p2716_p3 }
 0x28a   : > { %p2562_p13 = por %p2561_p12, %p2560_p11 }
 0x28b   : > { %p2558_p10 = pneg %p2557_p9 }
 0x28d   : > { %p2563_p0 = pnand %p2562_p13, %p2558_p10 }
 0x28f   : > { %2566 = shalt.err (!%p2563_p0)
}
 0x290   : > { %s2644_s6 = smov 64  }
 0x291   : > { %2386 = dma.vmem_to_hbm [thread:$0]  (%p2716_p3), %s3358_s16, 1024, %s3355_s8, %s3363_s9, %s2644_s6, %s2644_s6, %s2635_s11  }
 0x292 PF: > { %p2392_p1 = scmp.ge.s32.totalorder %s2633_s19, 2  ;;  %s1755_s7 = sand.u32 1, %s2605_s12  }
 0x293   : > { %s1756_s4 = scalar_lea.sflag [#allocation4], %s1755_s7 }
 0x294   : > { %p2389_p2 = pnand %p2392_p1, %p2725_p8 }
 0x296   : > { %p2390_p4 = pneg %p2389_p2 }
 0x298   : > { %2600 = dma.done.wait (%p2390_p4), %s1756_s4, 1024  }
 0x299   : > { %2602 = vsyncadd (%p2390_p4), %s1756_s4, 4294966272  ;;  %s16_s19 = sadd.s32 1, %s2633_s19   ;;  %s3421_s12 = smov %s2609_s13 }
 0x29a   : > { %p13_p5 = scmp.ge.s32.totalorder %s16_s19, 6   ;;  %s3422_s13 = smov %s2613_s14 }
 0x29b   : > { %s3423_s14 = smov %s2734_s30  ;;  %s3424_s15 = smov %s2625_s17 }
 0x29c   : > { %s3425_s16 = smov %s2629_s18  ;;  %s3426_s17 = smov %s3429_s22 }
 0x29d   : > { %s3427_s18 = smov %s3433_s23  ;;  %15 = sbr.rel (!%p13_p5) target bundleno = 5 (0x5), region = 70 }
 0x2a2   :  { %1761 = vsyncpa [#allocation4], 1 }
 0x2a3   :  { %1763 = vsyncpa [#allocation4 + $0x1], 1 }

</bundles_post_ra>
